<compile_context>
chip_gen: v6e
topology: v6e:2x2x1
jax: 0.10.0
libtpu: 0.0.40
codegen_flags: <defaults>
</compile_context>

<pallas_src>
import jax
import jax.numpy as jnp
from jax.experimental import pallas as pl
from jax.experimental.pallas import tpu as pltpu


def _round_up(x, m):
    return (x + m - 1) // m * m


def _sccmr_kernel(img_ref, text_ref,
                  wi1, bi1, wi2, bi2, wfi, bfi,     # img_net (3rd layer folded)
                  wt1, bt1, wt2, bt2, wft, bft,     # text_net (3rd layer folded)
                  wl2, bl2,                         # linearLayer2 (lane-padded)
                  v1f_ref, v2f_ref, v1p_ref, v2p_ref):
    bf16 = jnp.bfloat16

    def lin(x_bf16, w_ref, b_ref):
        # bf16 x bf16 MXU matmul with f32 accumulation; f32 bias add on the VPU.
        return (jnp.dot(x_bf16, w_ref[...], preferred_element_type=jnp.float32)
                + b_ref[...])

    # img branch: Linear -> Tanh -> Linear -> Tanh -> (Linear folded into wl)
    # tanh kept f32 (EUP); v6e/v7x could run it in bf16 for 2x packed throughput.
    h = jnp.tanh(lin(img_ref[...].astype(bf16), wi1, bi1))
    h = jnp.tanh(lin(h.astype(bf16), wi2, bi2))
    v1f = lin(h.astype(bf16), wfi, bfi)              # == linearLayer(img_net(img))
    v1p = lin(v1f.astype(bf16), wl2, bl2)            # == linearLayer2(view1_feature)

    # text branch
    g = jnp.tanh(lin(text_ref[...].astype(bf16), wt1, bt1))
    g = jnp.tanh(lin(g.astype(bf16), wt2, bt2))
    v2f = lin(g.astype(bf16), wft, bft)
    v2p = lin(v2f.astype(bf16), wl2, bl2)

    v1f_ref[...] = v1f.astype(v1f_ref.dtype)
    v2f_ref[...] = v2f.astype(v2f_ref.dtype)
    v1p_ref[...] = v1p.astype(v1p_ref.dtype)
    v2p_ref[...] = v2p.astype(v2p_ref.dtype)


def sccmr_nn_forward(img, text, params, *, batch_tile=512):
    """params: f32 weights stored (in, out) and biases (1, out), keys as in init_params."""
    B = img.shape[0]
    assert text.shape[0] == B
    img_in, text_in = img.shape[1], text.shape[1]
    ih = params["wi1"].shape[1]
    th = params["wt1"].shape[1]
    img_out = params["wi3"].shape[1]
    text_out = params["wt3"].shape[1]
    assert img_out == text_out == params["wl"].shape[0], \
        "shared linearLayer needs matching branch output dims"
    minus_one_dim = params["wl"].shape[1]
    output_dim = params["wl2"].shape[1]
    out_pad = _round_up(output_dim, 128)

    # --- Fold the third branch Linear into the shared linearLayer (f32 algebra).
    wfi = params["wi3"] @ params["wl"]                       # (ih, minus_one_dim)
    bfi = params["bi3"] @ params["wl"] + params["bl"]        # (1, minus_one_dim)
    wft = params["wt3"] @ params["wl"]
    bft = params["bt3"] @ params["wl"] + params["bl"]

    # --- Lane-pad linearLayer2 so the predict outputs are lane-dense (unmasked vst).
    wl2 = params["wl2"]
    bl2 = params["bl2"]
    if out_pad != output_dim:
        wl2 = jnp.pad(wl2, ((0, 0), (0, out_pad - output_dim)))
        bl2 = jnp.pad(bl2, ((0, 0), (0, out_pad - output_dim)))

    # bf16 weights (MXU-native, half the HBM->VMEM traffic); biases stay f32.
    f32, bf16 = jnp.float32, jnp.bfloat16
    param_args = [
        params["wi1"].astype(bf16), params["bi1"].astype(f32),
        params["wi2"].astype(bf16), params["bi2"].astype(f32),
        wfi.astype(bf16),           bfi.astype(f32),
        params["wt1"].astype(bf16), params["bt1"].astype(f32),
        params["wt2"].astype(bf16), params["bt2"].astype(f32),
        wft.astype(bf16),           bft.astype(f32),
        wl2.astype(bf16),           bl2.astype(f32),
    ]

    # --- Batch tiling: fewest grid steps, but keep >= 2 steps when the batch
    # allows it so v7x's two TensorCores both get work (extra step is ~0.35us
    # on 1-TC v5e/v6e). Inputs are f32 -> 8-row sublane alignment suffices.
    tb = _round_up(min(batch_tile, _round_up(B, 8)), 8)
    if _round_up(B, tb) // tb < 2 and B > 8:
        tb = _round_up((B + 1) // 2, 8)
    B_pad = _round_up(B, tb)
    grid = B_pad // tb

    imgp = jnp.pad(img, ((0, B_pad - B), (0, 0)))            # stays f32; cast in-kernel
    textp = jnp.pad(text, ((0, B_pad - B), (0, 0)))

    # Weights/biases: whole-array blocks, constant index_map -> VMEM-resident
    # across grid steps (no re-DMA).
    in_specs = (
        [pl.BlockSpec((tb, img_in), lambda i: (i, 0)),
         pl.BlockSpec((tb, text_in), lambda i: (i, 0))]
        + [pl.BlockSpec(a.shape, lambda i: (0, 0)) for a in param_args]
    )

    out_shapes = (
        jax.ShapeDtypeStruct((B_pad, minus_one_dim), jnp.float32),   # view1_feature
        jax.ShapeDtypeStruct((B_pad, minus_one_dim), jnp.float32),   # view2_feature
        jax.ShapeDtypeStruct((B_pad, out_pad), jnp.float32),         # view1_predict (padded)
        jax.ShapeDtypeStruct((B_pad, out_pad), jnp.float32),         # view2_predict (padded)
    )
    out_specs = (
        pl.BlockSpec((tb, minus_one_dim), lambda i: (i, 0)),
        pl.BlockSpec((tb, minus_one_dim), lambda i: (i, 0)),
        pl.BlockSpec((tb, out_pad), lambda i: (i, 0)),
        pl.BlockSpec((tb, out_pad), lambda i: (i, 0)),
    )

    # --- VMEM budget (double-buffered IO + resident params + live intermediates).
    in_buf = 2 * tb * (img_in + text_in) * 4
    out_buf = 2 * tb * (2 * minus_one_dim + 2 * out_pad) * 4
    param_buf = 2 * sum(a.size * a.dtype.itemsize for a in param_args)
    live = 4 * tb * max(ih, th, minus_one_dim, out_pad) * 4
    vmem_limit_bytes = int(min(max(2 * (in_buf + out_buf + param_buf + live),
                                   32 << 20), 64 << 20))

    # --- Advisory cost estimate for XLA's scheduler.
    def mm(m, k, n):
        return 2 * m * k * n

    flops = (mm(B_pad, img_in, ih) + mm(B_pad, ih, ih) + mm(B_pad, ih, minus_one_dim)
             + mm(B_pad, text_in, th) + mm(B_pad, th, th) + mm(B_pad, th, minus_one_dim)
             + 2 * mm(B_pad, minus_one_dim, out_pad))
    transcendentals = 2 * B_pad * (ih + th)
    bytes_accessed = (sum(a.size * a.dtype.itemsize for a in param_args)
                      + imgp.size * 4 + textp.size * 4
                      + sum(s.shape[0] * s.shape[1] * 4 for s in out_shapes))

    v1f, v2f, v1p, v2p = pl.pallas_call(
        _sccmr_kernel,
        grid=(grid,),
        in_specs=in_specs,
        out_specs=out_specs,
        out_shape=out_shapes,
        compiler_params=pltpu.CompilerParams(
            dimension_semantics=("parallel",),
            vmem_limit_bytes=vmem_limit_bytes),
        cost_estimate=pl.CostEstimate(flops=flops,
                                      transcendentals=transcendentals,
                                      bytes_accessed=bytes_accessed),
    )(imgp, textp, *param_args)

    # Strip batch padding and the lane pad of the tiny output_dim.
    return (v1f[:B], v2f[:B], v1p[:B, :output_dim], v2p[:B, :output_dim])


def init_params(key,
                img_input_dim, img_hidden_dim, img_output_dim,
                text_input_dim, text_hidden_dim, text_output_dim,
                minus_one_dim, output_dim):
    """Deterministic synthetic init. Weights stored (in, out); biases (1, out)."""
    def dense(k, fan_in, fan_out):
        kw, kb = jax.random.split(k)
        scale = 1.0 / jnp.sqrt(jnp.float32(fan_in))
        w = jax.random.uniform(kw, (fan_in, fan_out), jnp.float32, -scale, scale)
        b = jax.random.uniform(kb, (1, fan_out), jnp.float32, -scale, scale)
        return w, b

    keys = jax.random.split(key, 8)
    p = {}
    p["wi1"], p["bi1"] = dense(keys[0], img_input_dim, img_hidden_dim)
    p["wi2"], p["bi2"] = dense(keys[1], img_hidden_dim, img_hidden_dim)
    p["wi3"], p["bi3"] = dense(keys[2], img_hidden_dim, img_output_dim)
    p["wt1"], p["bt1"] = dense(keys[3], text_input_dim, text_hidden_dim)
    p["wt2"], p["bt2"] = dense(keys[4], text_hidden_dim, text_hidden_dim)
    p["wt3"], p["bt3"] = dense(keys[5], text_hidden_dim, text_output_dim)
    p["wl"],  p["bl"]  = dense(keys[6], img_output_dim, minus_one_dim)
    p["wl2"], p["bl2"] = dense(keys[7], minus_one_dim, output_dim)
    return p


def _reference_forward(img, text, p):
    """Pure-JAX reference mirroring the kernel's fused/folded bf16-at-dot math."""
    bf16, f32 = jnp.bfloat16, jnp.float32

    def lin(x, w, b):
        return (jnp.dot(x.astype(bf16), w.astype(bf16),
                        preferred_element_type=f32) + b.astype(f32))

    # Same f32 fold of the third branch layer into linearLayer as the wrapper.
    wfi = p["wi3"] @ p["wl"]
    bfi = p["bi3"] @ p["wl"] + p["bl"]
    wft = p["wt3"] @ p["wl"]
    bft = p["bt3"] @ p["wl"] + p["bl"]

    h = jnp.tanh(lin(img, p["wi1"], p["bi1"]))
    h = jnp.tanh(lin(h, p["wi2"], p["bi2"]))
    v1f = lin(h, wfi, bfi)
    v1p = lin(v1f, p["wl2"], p["bl2"])

    g = jnp.tanh(lin(text, p["wt1"], p["bt1"]))
    g = jnp.tanh(lin(g, p["wt2"], p["bt2"]))
    v2f = lin(g, wft, bft)
    v2p = lin(v2f, p["wl2"], p["bl2"])
    return v1f, v2f, v1p, v2p


if __name__ == "__main__":
    # Small shapes consistent with the module (lane-friendly feature dims).
    batch = 256
    img_input_dim, img_hidden_dim, img_output_dim = 256, 128, 128
    text_input_dim, text_hidden_dim, text_output_dim = 384, 128, 128
    minus_one_dim, output_dim = 128, 10

    key = jax.random.PRNGKey(0)
    k_img, k_text, k_params = jax.random.split(key, 3)

    img = jax.random.normal(k_img, (batch, img_input_dim), jnp.float32)
    text = jax.random.normal(k_text, (batch, text_input_dim), jnp.float32)

    params = init_params(
        k_params,
        img_input_dim, img_hidden_dim, img_output_dim,
        text_input_dim, text_hidden_dim, text_output_dim,
        minus_one_dim, output_dim,
    )

    outs = sccmr_nn_forward(img, text, params)
    outs = jax.block_until_ready(outs)

    refs = _reference_forward(img, text, params)
    for o, r in zip(outs, refs):
        assert o.shape == r.shape and o.dtype == r.dtype, (o.shape, r.shape)
        assert jnp.allclose(o, r, atol=1e-2, rtol=1e-2), float(jnp.max(jnp.abs(o - r)))

    print("KERNEL_OK")
</pallas_src>

<mosaic_0001>
module attributes {stable_mosaic.version = 11 : i64} {
  func.func @_sccmr_kernel(%arg0: i32, %arg1: memref<128x256xf32, #tpu.memory_space<vmem>>, %arg2: memref<128x384xf32, #tpu.memory_space<vmem>>, %arg3: memref<256x128xbf16, #tpu.memory_space<vmem>>, %arg4: memref<1x128xf32, #tpu.memory_space<vmem>>, %arg5: memref<128x128xbf16, #tpu.memory_space<vmem>>, %arg6: memref<1x128xf32, #tpu.memory_space<vmem>>, %arg7: memref<128x128xbf16, #tpu.memory_space<vmem>>, %arg8: memref<1x128xf32, #tpu.memory_space<vmem>>, %arg9: memref<384x128xbf16, #tpu.memory_space<vmem>>, %arg10: memref<1x128xf32, #tpu.memory_space<vmem>>, %arg11: memref<128x128xbf16, #tpu.memory_space<vmem>>, %arg12: memref<1x128xf32, #tpu.memory_space<vmem>>, %arg13: memref<128x128xbf16, #tpu.memory_space<vmem>>, %arg14: memref<1x128xf32, #tpu.memory_space<vmem>>, %arg15: memref<128x128xbf16, #tpu.memory_space<vmem>>, %arg16: memref<1x128xf32, #tpu.memory_space<vmem>>, %arg17: memref<128x128xf32, #tpu.memory_space<vmem>>, %arg18: memref<128x128xf32, #tpu.memory_space<vmem>>, %arg19: memref<128x128xf32, #tpu.memory_space<vmem>>, %arg20: memref<128x128xf32, #tpu.memory_space<vmem>>) attributes {dimension_semantics = [#tpu.dimension_semantics<parallel>], iteration_bounds = array<i64: 2>, scalar_prefetch = 0 : i64, scratch_operands = 0 : i64, tpu.core_type = #tpu.core_type<tc>, window_params = [{transform_indices = @transform_0, window_bounds = array<i64: 128, 256>}, {transform_indices = @transform_1, window_bounds = array<i64: 128, 384>}, {pipeline_mode = #tpu.pipeline_mode<synchronous>, transform_indices = @transform_2, window_bounds = array<i64: 256, 128>}, {pipeline_mode = #tpu.pipeline_mode<synchronous>, transform_indices = @transform_3, window_bounds = array<i64: 1, 128>}, {pipeline_mode = #tpu.pipeline_mode<synchronous>, transform_indices = @transform_4, window_bounds = array<i64: 128, 128>}, {pipeline_mode = #tpu.pipeline_mode<synchronous>, transform_indices = @transform_5, window_bounds = array<i64: 1, 128>}, {pipeline_mode = #tpu.pipeline_mode<synchronous>, transform_indices = @transform_6, window_bounds = array<i64: 128, 128>}, {pipeline_mode = #tpu.pipeline_mode<synchronous>, transform_indices = @transform_7, window_bounds = array<i64: 1, 128>}, {pipeline_mode = #tpu.pipeline_mode<synchronous>, transform_indices = @transform_8, window_bounds = array<i64: 384, 128>}, {pipeline_mode = #tpu.pipeline_mode<synchronous>, transform_indices = @transform_9, window_bounds = array<i64: 1, 128>}, {pipeline_mode = #tpu.pipeline_mode<synchronous>, transform_indices = @transform_10, window_bounds = array<i64: 128, 128>}, {pipeline_mode = #tpu.pipeline_mode<synchronous>, transform_indices = @transform_11, window_bounds = array<i64: 1, 128>}, {pipeline_mode = #tpu.pipeline_mode<synchronous>, transform_indices = @transform_12, window_bounds = array<i64: 128, 128>}, {pipeline_mode = #tpu.pipeline_mode<synchronous>, transform_indices = @transform_13, window_bounds = array<i64: 1, 128>}, {pipeline_mode = #tpu.pipeline_mode<synchronous>, transform_indices = @transform_14, window_bounds = array<i64: 128, 128>}, {pipeline_mode = #tpu.pipeline_mode<synchronous>, transform_indices = @transform_15, window_bounds = array<i64: 1, 128>}, {transform_indices = @transform_16, window_bounds = array<i64: 128, 128>}, {transform_indices = @transform_17, window_bounds = array<i64: 128, 128>}, {transform_indices = @transform_18, window_bounds = array<i64: 128, 128>}, {transform_indices = @transform_19, window_bounds = array<i64: 128, 128>}]} {
    %c0 = arith.constant 0 : index
    %c0_0 = arith.constant 0 : index
    %0 = vector.load %arg1[%c0, %c0_0] : memref<128x256xf32, #tpu.memory_space<vmem>>, vector<128x256xf32>
    %1 = arith.truncf %0 : vector<128x256xf32> to vector<128x256xbf16>
    %c0_1 = arith.constant 0 : index
    %c0_2 = arith.constant 0 : index
    %2 = vector.load %arg3[%c0_1, %c0_2] : memref<256x128xbf16, #tpu.memory_space<vmem>>, vector<256x128xbf16>
    %cst = arith.constant dense<0.000000e+00> : vector<128x128xf32>
    %3 = tpu.matmul %1, %2, %cst {dimension_numbers = #tpu.dot_dimension_numbers<[1], [0], [0], [1], [0, 0, 1, 1], [], []>} : vector<128x256xbf16>, vector<256x128xbf16>, vector<128x128xf32> -> vector<128x128xf32>
    %c0_3 = arith.constant 0 : index
    %c0_4 = arith.constant 0 : index
    %4 = vector.load %arg4[%c0_3, %c0_4] : memref<1x128xf32, #tpu.memory_space<vmem>>, vector<1x128xf32>
    %5 = vector.broadcast %4 : vector<1x128xf32> to vector<128x128xf32>
    %6 = arith.addf %3, %5 : vector<128x128xf32>
    %7 = math.tanh %6 : vector<128x128xf32>
    %8 = arith.truncf %7 : vector<128x128xf32> to vector<128x128xbf16>
    %c0_5 = arith.constant 0 : index
    %c0_6 = arith.constant 0 : index
    %9 = vector.load %arg5[%c0_5, %c0_6] : memref<128x128xbf16, #tpu.memory_space<vmem>>, vector<128x128xbf16>
    %cst_7 = arith.constant dense<0.000000e+00> : vector<128x128xf32>
    %10 = tpu.matmul %8, %9, %cst_7 {dimension_numbers = #tpu.dot_dimension_numbers<[1], [0], [0], [1], [0, 0, 1, 1], [], []>} : vector<128x128xbf16>, vector<128x128xbf16>, vector<128x128xf32> -> vector<128x128xf32>
    %c0_8 = arith.constant 0 : index
    %c0_9 = arith.constant 0 : index
    %11 = vector.load %arg6[%c0_8, %c0_9] : memref<1x128xf32, #tpu.memory_space<vmem>>, vector<1x128xf32>
    %12 = vector.broadcast %11 : vector<1x128xf32> to vector<128x128xf32>
    %13 = arith.addf %10, %12 : vector<128x128xf32>
    %14 = math.tanh %13 : vector<128x128xf32>
    %15 = arith.truncf %14 : vector<128x128xf32> to vector<128x128xbf16>
    %c0_10 = arith.constant 0 : index
    %c0_11 = arith.constant 0 : index
    %16 = vector.load %arg7[%c0_10, %c0_11] : memref<128x128xbf16, #tpu.memory_space<vmem>>, vector<128x128xbf16>
    %cst_12 = arith.constant dense<0.000000e+00> : vector<128x128xf32>
    %17 = tpu.matmul %15, %16, %cst_12 {dimension_numbers = #tpu.dot_dimension_numbers<[1], [0], [0], [1], [0, 0, 1, 1], [], []>} : vector<128x128xbf16>, vector<128x128xbf16>, vector<128x128xf32> -> vector<128x128xf32>
    %c0_13 = arith.constant 0 : index
    %c0_14 = arith.constant 0 : index
    %18 = vector.load %arg8[%c0_13, %c0_14] : memref<1x128xf32, #tpu.memory_space<vmem>>, vector<1x128xf32>
    %19 = vector.broadcast %18 : vector<1x128xf32> to vector<128x128xf32>
    %20 = arith.addf %17, %19 : vector<128x128xf32>
    %21 = arith.truncf %20 : vector<128x128xf32> to vector<128x128xbf16>
    %c0_15 = arith.constant 0 : index
    %c0_16 = arith.constant 0 : index
    %22 = vector.load %arg15[%c0_15, %c0_16] : memref<128x128xbf16, #tpu.memory_space<vmem>>, vector<128x128xbf16>
    %cst_17 = arith.constant dense<0.000000e+00> : vector<128x128xf32>
    %23 = tpu.matmul %21, %22, %cst_17 {dimension_numbers = #tpu.dot_dimension_numbers<[1], [0], [0], [1], [0, 0, 1, 1], [], []>} : vector<128x128xbf16>, vector<128x128xbf16>, vector<128x128xf32> -> vector<128x128xf32>
    %c0_18 = arith.constant 0 : index
    %c0_19 = arith.constant 0 : index
    %24 = vector.load %arg16[%c0_18, %c0_19] : memref<1x128xf32, #tpu.memory_space<vmem>>, vector<1x128xf32>
    %25 = vector.broadcast %24 : vector<1x128xf32> to vector<128x128xf32>
    %26 = arith.addf %23, %25 : vector<128x128xf32>
    %c0_20 = arith.constant 0 : index
    %c0_21 = arith.constant 0 : index
    %27 = vector.load %arg2[%c0_20, %c0_21] : memref<128x384xf32, #tpu.memory_space<vmem>>, vector<128x384xf32>
    %28 = arith.truncf %27 : vector<128x384xf32> to vector<128x384xbf16>
    %c0_22 = arith.constant 0 : index
    %c0_23 = arith.constant 0 : index
    %29 = vector.load %arg9[%c0_22, %c0_23] : memref<384x128xbf16, #tpu.memory_space<vmem>>, vector<384x128xbf16>
    %cst_24 = arith.constant dense<0.000000e+00> : vector<128x128xf32>
    %30 = tpu.matmul %28, %29, %cst_24 {dimension_numbers = #tpu.dot_dimension_numbers<[1], [0], [0], [1], [0, 0, 1, 1], [], []>} : vector<128x384xbf16>, vector<384x128xbf16>, vector<128x128xf32> -> vector<128x128xf32>
    %c0_25 = arith.constant 0 : index
    %c0_26 = arith.constant 0 : index
    %31 = vector.load %arg10[%c0_25, %c0_26] : memref<1x128xf32, #tpu.memory_space<vmem>>, vector<1x128xf32>
    %32 = vector.broadcast %31 : vector<1x128xf32> to vector<128x128xf32>
    %33 = arith.addf %30, %32 : vector<128x128xf32>
    %34 = math.tanh %33 : vector<128x128xf32>
    %35 = arith.truncf %34 : vector<128x128xf32> to vector<128x128xbf16>
    %c0_27 = arith.constant 0 : index
    %c0_28 = arith.constant 0 : index
    %36 = vector.load %arg11[%c0_27, %c0_28] : memref<128x128xbf16, #tpu.memory_space<vmem>>, vector<128x128xbf16>
    %cst_29 = arith.constant dense<0.000000e+00> : vector<128x128xf32>
    %37 = tpu.matmul %35, %36, %cst_29 {dimension_numbers = #tpu.dot_dimension_numbers<[1], [0], [0], [1], [0, 0, 1, 1], [], []>} : vector<128x128xbf16>, vector<128x128xbf16>, vector<128x128xf32> -> vector<128x128xf32>
    %c0_30 = arith.constant 0 : index
    %c0_31 = arith.constant 0 : index
    %38 = vector.load %arg12[%c0_30, %c0_31] : memref<1x128xf32, #tpu.memory_space<vmem>>, vector<1x128xf32>
    %39 = vector.broadcast %38 : vector<1x128xf32> to vector<128x128xf32>
    %40 = arith.addf %37, %39 : vector<128x128xf32>
    %41 = math.tanh %40 : vector<128x128xf32>
    %42 = arith.truncf %41 : vector<128x128xf32> to vector<128x128xbf16>
    %c0_32 = arith.constant 0 : index
    %c0_33 = arith.constant 0 : index
    %43 = vector.load %arg13[%c0_32, %c0_33] : memref<128x128xbf16, #tpu.memory_space<vmem>>, vector<128x128xbf16>
    %cst_34 = arith.constant dense<0.000000e+00> : vector<128x128xf32>
    %44 = tpu.matmul %42, %43, %cst_34 {dimension_numbers = #tpu.dot_dimension_numbers<[1], [0], [0], [1], [0, 0, 1, 1], [], []>} : vector<128x128xbf16>, vector<128x128xbf16>, vector<128x128xf32> -> vector<128x128xf32>
    %c0_35 = arith.constant 0 : index
    %c0_36 = arith.constant 0 : index
    %45 = vector.load %arg14[%c0_35, %c0_36] : memref<1x128xf32, #tpu.memory_space<vmem>>, vector<1x128xf32>
    %46 = vector.broadcast %45 : vector<1x128xf32> to vector<128x128xf32>
    %47 = arith.addf %44, %46 : vector<128x128xf32>
    %48 = arith.truncf %47 : vector<128x128xf32> to vector<128x128xbf16>
    %c0_37 = arith.constant 0 : index
    %c0_38 = arith.constant 0 : index
    %49 = vector.load %arg15[%c0_37, %c0_38] : memref<128x128xbf16, #tpu.memory_space<vmem>>, vector<128x128xbf16>
    %cst_39 = arith.constant dense<0.000000e+00> : vector<128x128xf32>
    %50 = tpu.matmul %48, %49, %cst_39 {dimension_numbers = #tpu.dot_dimension_numbers<[1], [0], [0], [1], [0, 0, 1, 1], [], []>} : vector<128x128xbf16>, vector<128x128xbf16>, vector<128x128xf32> -> vector<128x128xf32>
    %c0_40 = arith.constant 0 : index
    %c0_41 = arith.constant 0 : index
    %51 = vector.load %arg16[%c0_40, %c0_41] : memref<1x128xf32, #tpu.memory_space<vmem>>, vector<1x128xf32>
    %52 = vector.broadcast %51 : vector<1x128xf32> to vector<128x128xf32>
    %53 = arith.addf %50, %52 : vector<128x128xf32>
    %c0_42 = arith.constant 0 : index
    %c0_43 = arith.constant 0 : index
    %54 = vector.load %arg17[%c0_42, %c0_43] : memref<128x128xf32, #tpu.memory_space<vmem>>, vector<128x128xf32>
    tpu.vector_store %arg17[%c0_42, %c0_43], %20 {strides = array<i32>} : memref<128x128xf32, #tpu.memory_space<vmem>>, vector<128x128xf32>,
    %c0_44 = arith.constant 0 : index
    %c0_45 = arith.constant 0 : index
    %55 = vector.load %arg18[%c0_44, %c0_45] : memref<128x128xf32, #tpu.memory_space<vmem>>, vector<128x128xf32>
    tpu.vector_store %arg18[%c0_44, %c0_45], %47 {strides = array<i32>} : memref<128x128xf32, #tpu.memory_space<vmem>>, vector<128x128xf32>,
    %c0_46 = arith.constant 0 : index
    %c0_47 = arith.constant 0 : index
    %56 = vector.load %arg19[%c0_46, %c0_47] : memref<128x128xf32, #tpu.memory_space<vmem>>, vector<128x128xf32>
    tpu.vector_store %arg19[%c0_46, %c0_47], %26 {strides = array<i32>} : memref<128x128xf32, #tpu.memory_space<vmem>>, vector<128x128xf32>,
    %c0_48 = arith.constant 0 : index
    %c0_49 = arith.constant 0 : index
    %57 = vector.load %arg20[%c0_48, %c0_49] : memref<128x128xf32, #tpu.memory_space<vmem>>, vector<128x128xf32>
    tpu.vector_store %arg20[%c0_48, %c0_49], %53 {strides = array<i32>} : memref<128x128xf32, #tpu.memory_space<vmem>>, vector<128x128xf32>,
    return
  }
  func.func @transform_0(%arg0: i32) -> (i32, i32) {
    %c0_i32 = arith.constant 0 : i32
    %c0_i32_0 = arith.constant 0 : i32
    return %arg0, %c0_i32 : i32, i32
  }
  func.func @transform_1(%arg0: i32) -> (i32, i32) {
    %c0_i32 = arith.constant 0 : i32
    %c0_i32_0 = arith.constant 0 : i32
    return %arg0, %c0_i32 : i32, i32
  }
  func.func @transform_2(%arg0: i32) -> (i32, i32) {
    %c0_i32 = arith.constant 0 : i32
    %c0_i32_0 = arith.constant 0 : i32
    %c0_i32_1 = arith.constant 0 : i32
    return %c0_i32, %c0_i32_0 : i32, i32
  }
  func.func @transform_3(%arg0: i32) -> (i32, i32) {
    %c0_i32 = arith.constant 0 : i32
    %c0_i32_0 = arith.constant 0 : i32
    %c0_i32_1 = arith.constant 0 : i32
    return %c0_i32, %c0_i32_0 : i32, i32
  }
  func.func @transform_4(%arg0: i32) -> (i32, i32) {
    %c0_i32 = arith.constant 0 : i32
    %c0_i32_0 = arith.constant 0 : i32
    %c0_i32_1 = arith.constant 0 : i32
    return %c0_i32, %c0_i32_0 : i32, i32
  }
  func.func @transform_5(%arg0: i32) -> (i32, i32) {
    %c0_i32 = arith.constant 0 : i32
    %c0_i32_0 = arith.constant 0 : i32
    %c0_i32_1 = arith.constant 0 : i32
    return %c0_i32, %c0_i32_0 : i32, i32
  }
  func.func @transform_6(%arg0: i32) -> (i32, i32) {
    %c0_i32 = arith.constant 0 : i32
    %c0_i32_0 = arith.constant 0 : i32
    %c0_i32_1 = arith.constant 0 : i32
    return %c0_i32, %c0_i32_0 : i32, i32
  }
  func.func @transform_7(%arg0: i32) -> (i32, i32) {
    %c0_i32 = arith.constant 0 : i32
    %c0_i32_0 = arith.constant 0 : i32
    %c0_i32_1 = arith.constant 0 : i32
    return %c0_i32, %c0_i32_0 : i32, i32
  }
  func.func @transform_8(%arg0: i32) -> (i32, i32) {
    %c0_i32 = arith.constant 0 : i32
    %c0_i32_0 = arith.constant 0 : i32
    %c0_i32_1 = arith.constant 0 : i32
    return %c0_i32, %c0_i32_0 : i32, i32
  }
  func.func @transform_9(%arg0: i32) -> (i32, i32) {
    %c0_i32 = arith.constant 0 : i32
    %c0_i32_0 = arith.constant 0 : i32
    %c0_i32_1 = arith.constant 0 : i32
    return %c0_i32, %c0_i32_0 : i32, i32
  }
  func.func @transform_10(%arg0: i32) -> (i32, i32) {
    %c0_i32 = arith.constant 0 : i32
    %c0_i32_0 = arith.constant 0 : i32
    %c0_i32_1 = arith.constant 0 : i32
    return %c0_i32, %c0_i32_0 : i32, i32
  }
  func.func @transform_11(%arg0: i32) -> (i32, i32) {
    %c0_i32 = arith.constant 0 : i32
    %c0_i32_0 = arith.constant 0 : i32
    %c0_i32_1 = arith.constant 0 : i32
    return %c0_i32, %c0_i32_0 : i32, i32
  }
  func.func @transform_12(%arg0: i32) -> (i32, i32) {
    %c0_i32 = arith.constant 0 : i32
    %c0_i32_0 = arith.constant 0 : i32
    %c0_i32_1 = arith.constant 0 : i32
    return %c0_i32, %c0_i32_0 : i32, i32
  }
  func.func @transform_13(%arg0: i32) -> (i32, i32) {
    %c0_i32 = arith.constant 0 : i32
    %c0_i32_0 = arith.constant 0 : i32
    %c0_i32_1 = arith.constant 0 : i32
    return %c0_i32, %c0_i32_0 : i32, i32
  }
  func.func @transform_14(%arg0: i32) -> (i32, i32) {
    %c0_i32 = arith.constant 0 : i32
    %c0_i32_0 = arith.constant 0 : i32
    %c0_i32_1 = arith.constant 0 : i32
    return %c0_i32, %c0_i32_0 : i32, i32
  }
  func.func @transform_15(%arg0: i32) -> (i32, i32) {
    %c0_i32 = arith.constant 0 : i32
    %c0_i32_0 = arith.constant 0 : i32
    %c0_i32_1 = arith.constant 0 : i32
    return %c0_i32, %c0_i32_0 : i32, i32
  }
  func.func @transform_16(%arg0: i32) -> (i32, i32) {
    %c0_i32 = arith.constant 0 : i32
    %c0_i32_0 = arith.constant 0 : i32
    return %arg0, %c0_i32 : i32, i32
  }
  func.func @transform_17(%arg0: i32) -> (i32, i32) {
    %c0_i32 = arith.constant 0 : i32
    %c0_i32_0 = arith.constant 0 : i32
    return %arg0, %c0_i32 : i32, i32
  }
  func.func @transform_18(%arg0: i32) -> (i32, i32) {
    %c0_i32 = arith.constant 0 : i32
    %c0_i32_0 = arith.constant 0 : i32
    return %arg0, %c0_i32 : i32, i32
  }
  func.func @transform_19(%arg0: i32) -> (i32, i32) {
    %c0_i32 = arith.constant 0 : i32
    %c0_i32_0 = arith.constant 0 : i32
    return %arg0, %c0_i32 : i32, i32
  }
}

</mosaic_0001>

<bundles_post_ra>
// kernel: tpu_custom_call.1
= control target key start
LH: loop header
LB: loop body
LE: loop exit
PB: predicated region body
PF: predicated region fallthrough
CT: control target
= control target key end

     0   :  { %s5356_s0 = inlined_call_operand.hbm [shape: f32[256,256], index: 0, kind: input, shape index: {}]   ;;  %s5357_s1 = inlined_call_operand.hbm [shape: f32[256,384], index: 1, kind: input, shape index: {}]   ;;  %s5358_s2 = inlined_call_operand.hbm [shape: bf16[256,128], index: 2, kind: input, shape index: {}]   ;;  %s5359_s3 = inlined_call_operand.vmem [shape: f32[1,128], index: 3, kind: input, shape index: {}]   ;;  %s5360_s4 = inlined_call_operand.hbm [shape: bf16[128,128], index: 4, kind: input, shape index: {}]   ;;  %s5361_s5 = inlined_call_operand.vmem [shape: f32[1,128], index: 5, kind: input, shape index: {}]   ;;  %s5362_s6 = inlined_call_operand.hbm [shape: bf16[128,128], index: 6, kind: input, shape index: {}]   ;;  %s5363_s7 = inlined_call_operand.vmem [shape: f32[1,128], index: 7, kind: input, shape index: {}]   ;;  %s5364_s8 = inlined_call_operand.hbm [shape: bf16[384,128], index: 8, kind: input, shape index: {}]   ;;  %s5365_s9 = inlined_call_operand.vmem [shape: f32[1,128], index: 9, kind: input, shape index: {}]   ;;  %s5366_s10 = inlined_call_operand.hbm [shape: bf16[128,128], index: 10, kind: input, shape index: {}]   ;;  %s5367_s11 = inlined_call_operand.vmem [shape: f32[1,128], index: 11, kind: input, shape index: {}]   ;;  %s5368_s12 = inlined_call_operand.hbm [shape: bf16[128,128], index: 12, kind: input, shape index: {}]   ;;  %s5369_s13 = inlined_call_operand.vmem [shape: f32[1,128], index: 13, kind: input, shape index: {}]   ;;  %s5370_s14 = inlined_call_operand.hbm [shape: bf16[128,128], index: 14, kind: input, shape index: {}]   ;;  %s5371_s15 = inlined_call_operand.vmem [shape: f32[1,128], index: 15, kind: input, shape index: {}]   ;;  %s5372_s16 = inlined_call_operand.hbm [shape: f32[256,128], index: 16, kind: output, shape index: {0}]   ;;  %s5373_s17 = inlined_call_operand.hbm [shape: f32[256,128], index: 17, kind: output, shape index: {1}]   ;;  %s5374_s18 = inlined_call_operand.hbm [shape: f32[256,128], index: 18, kind: output, shape index: {2}]   ;;  %s5375_s19 = inlined_call_operand.hbm [shape: f32[256,128], index: 19, kind: output, shape index: {3}]  }
   0x1   :  { %5395 = sst [smem:[#allocation37_spill]] %s5356_s0 }
   0x2   :  { %5396 = sst [smem:[#allocation38_spill]] %s5357_s1 }
   0x3   :  { %5397 = sst [smem:[#allocation39_spill]] %s5358_s2 }
   0x4   :  { %5398 = sst [smem:[#allocation40_spill]] %s5359_s3 }
   0x5   :  { %5399 = sst [smem:[#allocation41_spill]] %s5360_s4 }
   0x6   :  { %5400 = sst [smem:[#allocation42_spill]] %s5362_s6 }
   0x7   :  { %5401 = sst [smem:[#allocation43_spill]] %s5364_s8 }
   0x8   :  { %5402 = sst [smem:[#allocation44_spill]] %s5366_s10 }
   0x9   :  { %5403 = sst [smem:[#allocation45_spill]] %s5368_s12 }
   0xa   :  { %5404 = sst [smem:[#allocation46_spill]] %s5370_s14 }
   0xb   :  { %5405 = sst [smem:[#allocation47_spill]] %s5372_s16 }
   0xc   :  { %5406 = sst [smem:[#allocation48_spill]] %s5374_s18 }
   0xd   :  { %5407 = sst [smem:[#allocation49_spill]] %s5375_s19 }
   0xe   :  { %25 = vsyncpa [#allocation3], 0 }
   0xf   :  { %27 = vsyncpa [#allocation3 + $0x1], 0 }
  0x10   :  { %28 = vsyncpa [#allocation6], 0 }
  0x11   :  { %30 = vsyncpa [#allocation6 + $0x1], 0 }
  0x12   :  { %31 = vsyncpa [#allocation9], 0 }
  0x13   :  { %32 = vsyncpa [#allocation12], 0 }
  0x14   :  { %33 = vsyncpa [#allocation15], 0 }
  0x15   :  { %34 = vsyncpa [#allocation4], 0 }
  0x16   :  { %36 = vsyncpa [#allocation4 + $0x1], 0 }
  0x17   :  { %37 = vsyncpa [#allocation19], 0 }
  0x18   :  { %39 = vsyncpa [#allocation19 + $0x1], 0 }
  0x19   :  { %40 = vsyncpa [#allocation22], 0 }
  0x1a   :  { %42 = vsyncpa [#allocation22 + $0x1], 0  ;;  %s4501_s0 = smov 0   ;;  %s4503_s30 = smov 0  }
  0x1b   :  { %s4505_s20 = smov 0   ;;  %s4507_s21 = smov 0  }
  0x1c LB: > { %5408 = sst [smem:[#allocation32_spill]] %s4366_s0  ;;  %s4380_s1 = smov [#allocation7]   ;;  %s4378_s21 = sphi %s4507_s21, %s5451_s21   ;;  %s4374_s20 = sphi %s4505_s20, %s5453_s20   ;;  %s4370_s30 = sphi %s4503_s30, %s5455_s30   ;;  %s4366_s0 = sphi %s4501_s0, %s5454_s0  }
  0x1d   : > { %5409 = sst [smem:[#allocation33_spill]] %s4374_s20  ;;  %s515_s22 = sshll.u32 %s4380_s1, 4  ;;  %s516_s22 = int_to_ptr.vmem [resolvable:$true] %s515_s22 }
  0x1e   : > { %s4522_s2 = sadd.s32 4294967295, %s4378_s21   ;;  %p2990_p0 = scmp.ge.s32.totalorder %s4378_s21, 1 }
  0x1f   : > { %p5382_p1 = scmp.eq.s32.totalorder %s4522_s2, 0  ;;  %p503_p2 = scmp.lt.s32.totalorder %s4378_s21, 3 }
  0x20   : > { %s4381_s24 = smov [#allocation8]   ;;  %s4382_s26 = smov [#allocation11]  }
  0x21   : > { %p4527_p3 = pnand %p2990_p0, %p503_p2  ;;  %s531_s25 = sshll.u32 %s4381_s24, 4  ;;  %s4540_s25 = int_to_ptr.vmem [resolvable:$true] %s531_s25 }
  0x22   : > { %s563_s27 = sshll.u32 %s4382_s26, 4  ;;  %s3981_s29 = scalar_lea.vmem %s516_s22, 2048  ;;  %s4542_s27 = int_to_ptr.vmem [resolvable:$true] %s563_s27 }
  0x23   : > { %p3649_p5 = pneg %p4527_p3  ;;  %p3982_p8 = scmp.ne.s32.totalorder %s516_s22, %s3981_s29 }
  0x24   : > { %p3989_p11 = scmp.lt.s32.totalorder %s516_s22, %s516_s22  ;;  %p3990_p12 = scmp.lt.s32.totalorder %s3981_s29, %s3981_s29 }
  0x25   : > { %p4536_p6 = pnand %p3649_p5, %p5382_p1 }
  0x26   : > { %p3991_p13 = por %p3990_p12, %p3989_p11 }
  0x27   : > { %p4546_p7 = pneg %p4536_p6 }
  0x29   : > { %p3984_p9 = pnand %p3982_p8, %p4546_p7 }
  0x2b   : > { %p3985_p10 = pneg %p3984_p9 }
  0x2d   : > { %p3992_p0 = pnand %p3991_p13, %p3985_p10 }
  0x2f   : > { %3995 = shalt.err (!%p3992_p0)
}
  0x30   : > { %s4383_s1 = smov 64   ;;  %s4384_s24 = smov 4  }
  0x31   : > { %s5413_s16 = sld [smem:[#allocation39_spill]]  ;;  %s4007_s18 = scalar_lea.vmem %s4540_s25, 1024 }
  0x32   : > { %p4008_p2 = scmp.ne.s32.totalorder %s4540_s25, %s4007_s18  ;;  %p4015_p9 = scmp.lt.s32.totalorder %s4540_s25, %s4540_s25 }
  0x33   : > { %p4016_p10 = scmp.lt.s32.totalorder %s4007_s18, %s4007_s18 }
  0x34   : > { %p4010_p5 = pnand %p4008_p2, %p4546_p7 }
  0x35   : > { %p4017_p11 = por %p4016_p10, %p4015_p9 }
  0x36   : > { %p4011_p8 = pneg %p4010_p5 }
  0x37   : > { %3652 = dma.hbm_to_vmem [thread:$0]  (!%p4536_p6), %s5413_s16, 2048, %s516_s22, [#allocation6], %s4383_s1, %s4383_s1, %s4384_s24  }
  0x38   : > { %p4018_p12 = pnand %p4017_p11, %p4011_p8 }
  0x3a   : > { %4021 = shalt.err (!%p4018_p12)
}
  0x3b   : > { %s5414_s4 = sld [smem:[#allocation41_spill]]  ;;  %s4033_s16 = scalar_lea.vmem %s4542_s27, 3072 }
  0x3c   : > { %p4034_p13 = scmp.ne.s32.totalorder %s4542_s27, %s4033_s16  ;;  %p4041_p5 = scmp.lt.s32.totalorder %s4542_s27, %s4542_s27 }
  0x3d   : > { %p4042_p8 = scmp.lt.s32.totalorder %s4033_s16, %s4033_s16 }
  0x3e   : > { %p4036_p0 = pnand %p4034_p13, %p4546_p7 }
  0x3f   : > { %p4043_p9 = por %p4042_p8, %p4041_p5 }
  0x40   : > { %p4037_p2 = pneg %p4036_p0 }
  0x41   : > { %3655 = dma.hbm_to_vmem [thread:$0]  (!%p4536_p6), %s5414_s4, 1024, %s4540_s25, [#allocation9], %s4383_s1, %s4383_s1, %s4384_s24  }
  0x42   : > { %p4044_p10 = pnand %p4043_p9, %p4037_p2 }
  0x44   : > { %4047 = shalt.err (!%p4044_p10)
}
  0x45   : > { %s5415_s8 = sld [smem:[#allocation43_spill]]  ;;  %s4385_s25 = smov [#allocation14]  }
  0x46   : > { %s595_s26 = sshll.u32 %s4385_s25, 4  ;;  %s4386_s29 = smov [#allocation10]   ;;  %s596_s26 = int_to_ptr.vmem [resolvable:$true] %s595_s26 }
  0x47   : > { %s547_s19 = sshll.u32 %s4386_s29, 4  ;;  %s4059_s16 = scalar_lea.vmem %s596_s26, 1024  ;;  %s548_s19 = int_to_ptr.vmem [resolvable:$true] %s547_s19 }
  0x48   : > { %p4060_p11 = scmp.ne.s32.totalorder %s596_s26, %s4059_s16  ;;  %p4067_p0 = scmp.lt.s32.totalorder %s596_s26, %s596_s26 }
  0x49   : > { %p4068_p2 = scmp.lt.s32.totalorder %s4059_s16, %s4059_s16 }
  0x4a   : > { %p4062_p12 = pnand %p4060_p11, %p4546_p7 }
  0x4b   : > { %3661 = dma.hbm_to_vmem [thread:$0]  (!%p4536_p6), %s5415_s8, 3072, %s4542_s27, [#allocation12], %s4383_s1, %s4383_s1, %s4384_s24  }
  0x4c   : > { %p4063_p13 = pneg %p4062_p12  ;;  %p4069_p5 = por %p4068_p2, %p4067_p0 }
  0x4e   : > { %p4070_p8 = pnand %p4069_p5, %p4063_p13 }
  0x50   : > { %4073 = shalt.err (!%p4070_p8)
}
  0x51   : > { %s5416_s12 = sld [smem:[#allocation45_spill]]  ;;  %s4085_s22 = scalar_lea.vmem %s548_s19, 1024 }
  0x52   : > { %p4086_p9 = scmp.ne.s32.totalorder %s548_s19, %s4085_s22  ;;  %p4093_p12 = scmp.lt.s32.totalorder %s548_s19, %s548_s19 }
  0x53   : > { %p4094_p0 = scmp.lt.s32.totalorder %s4085_s22, %s4085_s22 }
  0x54   : > { %p4088_p10 = pnand %p4086_p9, %p4546_p7 }
  0x55   : > { %p4095_p13 = por %p4094_p0, %p4093_p12 }
  0x56   : > { %p4089_p11 = pneg %p4088_p10 }
  0x57   : > { %3667 = dma.hbm_to_vmem [thread:$0]  (!%p4536_p6), %s5416_s12, 1024, %s596_s26, [#allocation15], %s4383_s1, %s4383_s1, %s4384_s24  }
  0x58   : > { %p4096_p2 = pnand %p4095_p13, %p4089_p11 }
  0x5a   : > { %4099 = shalt.err (!%p4096_p2)
}
  0x5b   : > { %s5417_s6 = sld [smem:[#allocation42_spill]]  ;;  %s4387_s26 = smov [#allocation13]  }
  0x5c   : > { %s579_s16 = sshll.u32 %s4387_s26, 4  ;;  %s4388_s27 = smov [#allocation16]   ;;  %s580_s16 = int_to_ptr.vmem [resolvable:$true] %s579_s16 }
  0x5d   : > { %s611_s18 = sshll.u32 %s4388_s27, 4  ;;  %s4111_s4 = scalar_lea.vmem %s580_s16, 1024  ;;  %s612_s18 = int_to_ptr.vmem [resolvable:$true] %s611_s18 }
  0x5e   : > { %p4112_p5 = scmp.ne.s32.totalorder %s580_s16, %s4111_s4  ;;  %p4119_p10 = scmp.lt.s32.totalorder %s580_s16, %s580_s16 }
  0x5f   : > { %p4120_p11 = scmp.lt.s32.totalorder %s4111_s4, %s4111_s4 }
  0x60   : > { %p4114_p8 = pnand %p4112_p5, %p4546_p7 }
  0x61   : > { %3658 = dma.hbm_to_vmem [thread:$0]  (!%p4536_p6), %s5417_s6, 1024, %s548_s19, [#allocation9], %s4383_s1, %s4383_s1, %s4384_s24  }
  0x62   : > { %p4115_p9 = pneg %p4114_p8  ;;  %p4121_p12 = por %p4120_p11, %p4119_p10 }
  0x64   : > { %p4122_p0 = pnand %p4121_p12, %p4115_p9 }
  0x66   : > { %4125 = shalt.err (!%p4122_p0)
}
  0x67   : > { %s5418_s10 = sld [smem:[#allocation44_spill]]  ;;  %s4137_s25 = scalar_lea.vmem %s612_s18, 1024 }
  0x68   : > { %p4138_p13 = scmp.ne.s32.totalorder %s612_s18, %s4137_s25  ;;  %p4145_p8 = scmp.lt.s32.totalorder %s612_s18, %s612_s18 }
  0x69   : > { %p4146_p10 = scmp.lt.s32.totalorder %s4137_s25, %s4137_s25 }
  0x6a   : > { %p4140_p2 = pnand %p4138_p13, %p4546_p7 }
  0x6b   : > { %p4147_p9 = por %p4146_p10, %p4145_p8 }
  0x6c   : > { %p4141_p5 = pneg %p4140_p2 }
  0x6d   : > { %3664 = dma.hbm_to_vmem [thread:$0]  (!%p4536_p6), %s5418_s10, 1024, %s580_s16, [#allocation12], %s4383_s1, %s4383_s1, %s4384_s24  }
  0x6e   : > { %p4148_p11 = pnand %p4147_p9, %p4141_p5 }
  0x70   : > { %4151 = shalt.err (!%p4148_p11)
}
  0x71   : > { %s5419_s14 = sld [smem:[#allocation46_spill]]  ;;  %s5381_s3 = sadd.s32 4294967294, %s4378_s21  }
  0x72   : > { %s4632_s28 = sadd.s32 1, %s4378_s21   ;;  %s55_s26 = sadd.s32 1, %s4374_s20 }
  0x73   : > { %5420 = sst [smem:[#allocation34_spill]] %s4632_s28  ;;  %s52_s16 = ssub.s32 %s4378_s21, %s4632_s28 }
  0x74   : > { %p62_p7 = scmp.ne.s32.totalorder %s4374_s20, %s4370_s30  ;;  %p53_p12 = scmp.eq.s32.totalorder %s52_s16, 0 }
  0x75   : > { %p63_p0 = scmp.eq.s32.totalorder %s4378_s21, 0  ;;  %p68_p13 = scmp.ne.s32.totalorder %s4370_s30, %s4366_s0 }
  0x76   : > { %p412_p2 = scmp.eq.s32.totalorder %s4522_s2, 1  ;;  %p418_p10 = scmp.eq.s32.totalorder %s5381_s3, 1 }
  0x77   : > { %3670 = dma.hbm_to_vmem [thread:$0]  (!%p4536_p6), %s5419_s14, 1024, %s612_s18, [#allocation15], %s4383_s1, %s4383_s1, %s4384_s24  }
  0x78   : > { %s4644_s27 = scalar_select %p53_p12, %s4374_s20, %s55_s26  }
  0x79   : > { %p64_p5 = por %p63_p0, %p62_p7  ;;  %p4648_p8 = por %p5382_p1, %p68_p13 }
  0x7a   : > { %5421 = sst [smem:[#allocation35_spill]] %s4644_s27  ;;  %p4652_p6 = por %p412_p2, %p62_p7 }
  0x7b   : > { %s5422_s19 = scalar_select %p4648_p8, 1, 0 }
  0x7c   : > { %s5423_s1 = scalar_select %p4652_p6, 1, 0 }
  0x7d   : > { %p3698_p9 = scmp.lt.s32.totalorder %s4378_s21, 2  ;;  %s4660_s24 = sand.u32 1, %s4374_s20  }
  0x7e   : > { %p4662_p11 = por %p418_p10, %p68_p13  ;;  %s2999_s22 = sshll.u32 %s4660_s24, 8 }
  0x7f   : > { %s3121_s25 = sshll.u32 %s4378_s21, 12  ;;  %s5426_s26 = sld [smem:[#allocation37_spill]] }
  0x80   : > { %s5424_s18 = scalar_select %p4662_p11, 1, 0 }
  0x81   : > { %s632_s3 = scalar_lea.vmem [#allocation2], %s2999_s22  ;;  %p4673_p7 = pnand %p3698_p9, %p64_p5 }
  0x82   : > { %5425 = sst [smem:[#allocation36_spill]] %s5424_s18  ;;  %s640_s6 = sshll.u32 %s632_s3, 4  ;;  %s4677_s6 = int_to_ptr.vmem [resolvable:$true] %s640_s6 }
  0x83   : > { %p4154_p0 = pneg %p4673_p7 }
  0x85   : > { %s4671_s16 = scalar_lea.hbm %s5426_s26, %s3121_s25  ;;  %s4157_s3 = scalar_lea.hbm %s5426_s26, 8192 }
  0x86   : > { %s4152_s12 = scalar_lea.hbm %s4671_s16, 4096  ;;  %p4158_p5 = scmp.lt.s32.totalorder %s4671_s16, %s5426_s26 }
  0x87   : > { %p4153_p12 = scmp.ne.s32.totalorder %s4671_s16, %s4152_s12  ;;  %p4159_p10 = scmp.lt.s32.totalorder %s4157_s3, %s4152_s12 }
  0x89   : > { %p4155_p13 = pnand %p4154_p0, %p4153_p12  ;;  %p4160_p9 = por %p4159_p10, %p4158_p5 }
  0x8b   : > { %p4156_p2 = pneg %p4155_p13 }
  0x8d   : > { %p4161_p4 = pnand %p4160_p9, %p4156_p2 }
  0x8f   : > { %4164 = shalt.err (!%p4161_p4)
}
  0x90   : > { %s4165_s10 = scalar_lea.vmem %s4677_s6, 4096  ;;  %s4389_s25 = smov [#allocation2]  }
  0x91   : > { %p4166_p1 = scmp.ne.s32.totalorder %s4677_s6, %s4165_s10  ;;  %s4170_s22 = sshll.u32 %s4389_s25, 4  ;;  %s4171_s22 = int_to_ptr.vmem [resolvable:$false] %s4170_s22 }
  0x92   : > { %s4172_s14 = scalar_lea.vmem %s4171_s22, 8192  ;;  %p4173_p11 = scmp.lt.s32.totalorder %s4677_s6, %s4171_s22 }
  0x93   : > { %p4168_p12 = pnand %p4166_p1, %p4154_p0  ;;  %p4174_p6 = scmp.lt.s32.totalorder %s4172_s14, %s4165_s10 }
  0x95   : > { %p4169_p13 = pneg %p4168_p12  ;;  %p4175_p8 = por %p4174_p6, %p4173_p11 }
  0x97   : > { %p4176_p5 = pnand %p4175_p8, %p4169_p13 }
  0x99   : > { %4179 = shalt.err (!%p4176_p5)
}
  0x9a   : > { %s4390_s12 = smov 256   ;;  %s4391_s3 = smov 16  }
  0x9b   : > { %s5428_s4 = scalar_lea.sflag [#allocation3], %s4660_s24  ;;  %s650_s29 = sand.u32 1, %s4378_s21  }
  0x9c   : > { %3674 = dma.hbm_to_vmem [thread:$0]  (!%p4673_p7), %s4671_s16, 4096, %s4677_s6, %s5428_s4, %s4390_s12, %s4390_s12, %s4391_s3  }
  0x9d   : > { %s3606_s25 = smul.u32 384, %s4660_s24  ;;  %s5429_s26 = sld [smem:[#allocation38_spill]] }
  0x9e   : > { %s3607_s22 = smul.u32 6144, %s4378_s21  ;;  %s4716_s18 = scalar_lea.sflag [#allocation6], %s650_s29 }
  0x9f   : > { %s654_s20 = scalar_lea.vmem [#allocation5], %s3606_s25 }
  0xa0   : > { %s662_s28 = sshll.u32 %s654_s20, 4  ;;  %s4714_s28 = int_to_ptr.vmem [resolvable:$true] %s662_s28 }
  0xa3   : > { %s4712_s27 = scalar_lea.hbm %s5429_s26, %s3607_s22  ;;  %s4185_s16 = scalar_lea.hbm %s5429_s26, 12288 }
  0xa4   : > { %s4180_s0 = scalar_lea.hbm %s4712_s27, 6144  ;;  %p4186_p6 = scmp.lt.s32.totalorder %s4712_s27, %s5429_s26 }
  0xa5   : > { %p4181_p1 = scmp.ne.s32.totalorder %s4712_s27, %s4180_s0  ;;  %p4187_p11 = scmp.lt.s32.totalorder %s4185_s16, %s4180_s0 }
  0xa7   : > { %p4183_p4 = pnand %p4181_p1, %p4154_p0  ;;  %p4188_p2 = por %p4187_p11, %p4186_p6 }
  0xa9   : > { %p4184_p8 = pneg %p4183_p4 }
  0xab   : > { %p4189_p10 = pnand %p4188_p2, %p4184_p8 }
  0xad   : > { %4192 = shalt.err (!%p4189_p10)
}
  0xae   : > { %s4193_s20 = scalar_lea.vmem %s4714_s28, 6144  ;;  %s4392_s4 = smov [#allocation5]  }
  0xaf   : > { %p4194_p9 = scmp.ne.s32.totalorder %s4714_s28, %s4193_s20  ;;  %s4198_s29 = sshll.u32 %s4392_s4, 4  ;;  %s4199_s29 = int_to_ptr.vmem [resolvable:$false] %s4198_s29 }
  0xb0   : > { %s4200_s25 = scalar_lea.vmem %s4199_s29, 12288  ;;  %p4201_p5 = scmp.lt.s32.totalorder %s4714_s28, %s4199_s29 }
  0xb1   : > { %p4196_p12 = pnand %p4194_p9, %p4154_p0  ;;  %p4202_p1 = scmp.lt.s32.totalorder %s4200_s25, %s4193_s20 }
  0xb3   : > { %p4197_p13 = pneg %p4196_p12  ;;  %p4203_p4 = por %p4202_p1, %p4201_p5 }
  0xb5   : > { %p4204_p6 = pnand %p4203_p4, %p4197_p13 }
  0xb7   : > { %4207 = shalt.err (!%p4204_p6)
}
  0xb8   : > { %s4393_s0 = smov 384   ;;  %s4394_s22 = smov 24  }
  0xb9   : > { %3677 = dma.hbm_to_vmem [thread:$0]  (!%p4673_p7), %s4712_s27, 6144, %s4714_s28, %s4716_s18, %s4393_s0, %s4393_s0, %s4394_s22  }
  0xba   : > { %674 = sbr.rel (%p4527_p3) target bundleno = 1824 (0x720), region = 84  ;;  %s4744_s10 = sand.u32 (!%p4527_p3), 1, %s4370_s30  }
  0xbb   : > { %s3007_s14 = sshll.u32 (!%p4527_p3), %s4744_s10, 8  ;;  %s677_s6 = scalar_lea.sflag (!%p4527_p3), [#allocation3], %s4744_s10 }
  0xbc   : > { %s4748_s24 = scalar_lea.vmem (!%p4527_p3), [#allocation2], %s3007_s14  ;;  %p5430_p0 = scmp.ne.s32.totalorder (!%p4527_p3), %s5422_s19, 0 }
  0xbf   : > { %4329 = dma.done.wait (%p5430_p0), %s677_s6, 4096  }
  0xc0   : > { %4331 = vsyncadd (%p5430_p0), %s677_s6, 4294963200  ;;  %s685_s8 = sand.u32 1, %s4522_s2   ;;  %s3608_s23 = smul.u32 384, %s4744_s10 }
  0xc1   : > { %s686_s28 = scalar_lea.sflag [#allocation6], %s685_s8 }
  0xc2   : > { %s4758_s27 = scalar_lea.vmem [#allocation5], %s3608_s23 }
  0xc3   : > { %4333 = dma.done.wait (%p5430_p0), %s686_s28, 6144  }
  0xc4   : > { %4335 = vsyncadd (%p5430_p0), %s686_s28, 4294961152  ;;  %p5431_p3 = scmp.eq.s32.totalorder %s4522_s2, 0 }
  0xc6   : > { %4337 = dma.done.wait (%p5431_p3), [#allocation6], 2048   ;;  %p5432_p7 = pmov %p5431_p3 }
  0xc7   : > { %p5433_p8 = pmov %p5431_p3 }
  0xc8   : > { %4339 = vsyncadd (%p5432_p7), [#allocation6], 4294965248 }
  0xc9   : > { %4341 = dma.done.wait (%p5433_p8), [#allocation9], 2048   ;;  %p5434_p11 = pmov %p5431_p3 }
  0xca   : > { %p5435_p2 = pmov %p5431_p3 }
  0xcb   : > { %4343 = vsyncadd (%p5434_p11), [#allocation9], 4294965248 }
  0xcc   : > { %4345 = dma.done.wait (%p5435_p2), [#allocation12], 4096   ;;  %p5436_p10 = pmov %p5435_p2 }
  0xcd   : > { %p5437_p9 = pmov %p5435_p2 }
  0xce   : > { %4347 = vsyncadd (%p5436_p10), [#allocation12], 4294963200 }
  0xcf   : > { %4349 = dma.done.wait (%p5437_p9), [#allocation15], 2048   ;;  %p5438_p12 = pmov %p5435_p2 }
  0xd0   : > { %v3754_v0 = vld [vmem:[#allocation7 + $0x78] sm:$0xff]   ;;  %v3756_v2 = vld [vmem:[#allocation7 + $0x70] sm:$0xff]   ;;  %v3758_v4 = vld [vmem:[#allocation7 + $0x68] sm:$0xff]   ;;  %s5439_s16 = sld [smem:[#allocation40_spill]]  ;;  %s4906_s20 = sshll.u32 %s4744_s10, 7 }
  0xd1   : > { %4351 = vsyncadd (%p5438_p12), [#allocation15], 4294965248  ;;  %v3755_v1 = vld [vmem:[#allocation7 + $0x38] sm:$0xff]   ;;  %3126 = vmatprep.subr.bf16.mxu0 %v3754_v0  ;;  %v3757_v3 = vld [vmem:[#allocation7 + $0x30] sm:$0xff]   ;;  %s4915_s25 = scalar_lea.vmem [#allocation17], %s4906_s20  ;;  %s4999_s14 = scalar_lea.vmem [#allocation20], %s4906_s20 }
  0xd2   : > { %3127 = vmatpush3.bf16.msra.mxu0 %v3755_v1  ;;  %v3759_v5 = vld [vmem:[#allocation7 + $0x28] sm:$0xff]   ;;  %v3760_v6 = vld [vmem:[#allocation7 + $0x60] sm:$0xff]   ;;  %v3762_v8 = vld [vmem:[#allocation7 + $0x58] sm:$0xff]   ;;  %s5144_s18 = scalar_lea.vmem [#allocation18], %s4906_s20  ;;  %s5440_s6 = sld [smem:[#allocation48_spill]] }
  0xd3   : > { %3128 = vmatprep.subr.bf16.mxu0 %v3756_v2  ;;  %v3761_v7 = vld [vmem:[#allocation7 + $0x20] sm:$0xff]   ;;  %v3763_v9 = vld [vmem:[#allocation7 + $0x18] sm:$0xff]   ;;  %v3764_v10 = vld [vmem:[#allocation7 + $0x50] sm:$0xff]   ;;  %s2702_s12 = sshll.u32 %s5144_s18, 4  ;;  %s5182_s23 = scalar_lea.sflag [#allocation19], %s685_s8  ;;  %s5172_s12 = int_to_ptr.vmem [resolvable:$true] %s2702_s12 }
  0xd4   : > { %v800_v11 = vld [vmem:[%s4748_s24 + $0x8] sm:$0xff]  ;;  %v802_v12 = vld [vmem:[%s4748_s24 + $0x18] sm:$0xff]  ;;  %v3765_v14 = vld [vmem:[#allocation7 + $0x10] sm:$0xff]   ;;  %s4208_s28 = scalar_lea.vmem %s5172_s12, 2048  ;;  %p5441_p5 = scmp.ne.s32.totalorder %s5423_s1, 0 }
  0xd5   : > { %v832_v13 = vpack.c.bf16 %v802_v12, %v800_v11  ;;  %v3766_v15 = vld [vmem:[#allocation7 + $0x48] sm:$0xff]   ;;  %v3768_v17 = vld [vmem:[#allocation7 + $0x40] sm:$0xff]   ;;  %v801_v20 = vld [vmem:[%s4748_s24 + $0x10] sm:$0xff]  ;;  %p4209_p13 = scmp.ne.s32.totalorder %s5172_s12, %s4208_s28 }
  0xd6   : > { %3129 = vmatpush3.bf16.msra.mxu0 %v3757_v3  ;;  %v3767_v16 = vld [vmem:[#allocation7 + $0x8] sm:$0xff]   ;;  %v3769_v18 = vld [vmem:[#allocation7] sm:$0xff]   ;;  %v806_v22 = vld [vmem:[%s4748_s24 + $0x38] sm:$0xff] }
  0xd7   : > { %3130 = vmatprep.subr.bf16.mxu0 %v3758_v4  ;;  %1014 = vmatprep.mubr.bf16.mxu0 %v832_v13  ;;  %v799_v19 = vld [vmem:[%s4748_s24] sm:$0xff]  ;;  %v804_v21 = vld [vmem:[%s4748_s24 + $0x28] sm:$0xff]  ;;  %v805_v26 = vld [vmem:[%s4748_s24 + $0x30] sm:$0xff]  ;;  %p4210_p1 = pnand %p4209_p13, %p5441_p5 }
  0xd8   : > { %v831_v23 = vpack.c.bf16 %v801_v20, %v799_v19  ;;  %v834_v24 = vpack.c.bf16 %v806_v22, %v804_v21  ;;  %v803_v25 = vld [vmem:[%s4748_s24 + $0x20] sm:$0xff]  ;;  %v808_v27 = vld [vmem:[%s4748_s24 + $0x48] sm:$0xff]  ;;  %v810_v28 = vld [vmem:[%s4748_s24 + $0x58] sm:$0xff] }
  0xd9   : > { %v833_v29 = vpack.c.bf16 %v805_v26, %v803_v25  ;;  %v836_v30 = vpack.c.bf16 %v810_v28, %v808_v27  ;;  %v807_v31 = vld [vmem:[%s4748_s24 + $0x40] sm:$0xff]  ;;  %v809_v32 = vld [vmem:[%s4748_s24 + $0x50] sm:$0xff]  ;;  %v812_v33 = vld [vmem:[%s4748_s24 + $0x68] sm:$0xff]  ;;  %p4211_p4 = pneg %p4210_p1 }
  0xda   : > { %3131 = vmatpush3.bf16.msra.mxu0 %v3759_v5  ;;  %v814_v34 = vld [vmem:[%s4748_s24 + $0x78] sm:$0xff]  ;;  %v835_v35 = vpack.c.bf16 %v809_v32, %v807_v31  ;;  %v811_v37 = vld [vmem:[%s4748_s24 + $0x60] sm:$0xff]  ;;  %v813_v38 = vld [vmem:[%s4748_s24 + $0x70] sm:$0xff] }
  0xdb   : > { %3132 = vmatprep.subr.bf16.mxu0 %v3760_v6  ;;  %v838_v36 = vpack.c.bf16 %v814_v34, %v812_v33  ;;  %v816_v39 = vld [vmem:[%s4748_s24 + $0x88] sm:$0xff]  ;;  %v818_v40 = vld [vmem:[%s4748_s24 + $0x98] sm:$0xff]  ;;  %v837_v41 = vpack.c.bf16 %v813_v38, %v811_v37  ;;  %v815_v43 = vld [vmem:[%s4748_s24 + $0x80] sm:$0xff] }
  0xdc   : > { %v840_v42 = vpack.c.bf16 %v818_v40, %v816_v39  ;;  %v817_v44 = vld [vmem:[%s4748_s24 + $0x90] sm:$0xff]  ;;  %v820_v45 = vld [vmem:[%s4748_s24 + $0xa8] sm:$0xff]  ;;  %v822_v46 = vld [vmem:[%s4748_s24 + $0xb8] sm:$0xff] }
  0xdd   : > { %v839_v47 = vpack.c.bf16 %v817_v44, %v815_v43  ;;  %v842_v48 = vpack.c.bf16 %v822_v46, %v820_v45  ;;  %v819_v49 = vld [vmem:[%s4748_s24 + $0xa0] sm:$0xff]  ;;  %v821_v50 = vld [vmem:[%s4748_s24 + $0xb0] sm:$0xff]  ;;  %v824_v51 = vld [vmem:[%s4748_s24 + $0xc8] sm:$0xff] }
  0xde   : > { %3133 = vmatpush3.bf16.msra.mxu0 %v3761_v7  ;;  %v826_v52 = vld [vmem:[%s4748_s24 + $0xd8] sm:$0xff]  ;;  %v841_v53 = vpack.c.bf16 %v821_v50, %v819_v49  ;;  %v823_v55 = vld [vmem:[%s4748_s24 + $0xc0] sm:$0xff]  ;;  %v825_v56 = vld [vmem:[%s4748_s24 + $0xd0] sm:$0xff] }
  0xdf   : > { %3134 = vmatprep.subr.bf16.mxu0 %v3762_v8  ;;  %v844_v54 = vpack.c.bf16 %v826_v52, %v824_v51  ;;  %v828_v57 = vld [vmem:[%s4748_s24 + $0xe8] sm:$0xff]  ;;  %v830_v58 = vld [vmem:[%s4748_s24 + $0xf8] sm:$0xff]  ;;  %v843_v59 = vpack.c.bf16 %v825_v56, %v823_v55  ;;  %v827_v61 = vld [vmem:[%s4748_s24 + $0xe0] sm:$0xff] }
  0xe0   : > { %v846_v60 = vpack.c.bf16 %v830_v58, %v828_v57  ;;  %v829_v62 = vld [vmem:[%s4748_s24 + $0xf0] sm:$0xff]  ;;  %v3770_v0 = vld [vmem:[#allocation8 + $0x38] sm:$0xff]   ;;  %v3772_v2 = vld [vmem:[#allocation8 + $0x28] sm:$0xff]  }
  0xe1   : > { %v845_v63 = vpack.c.bf16 %v829_v62, %v827_v61  ;;  %3366 = vmatprep.subr.bf16.mxu1 %v3770_v0  ;;  %v3771_v1 = vld [vmem:[#allocation8 + $0x30] sm:$0xff]   ;;  %v3773_v3 = vld [vmem:[#allocation8 + $0x20] sm:$0xff]   ;;  %v3774_v4 = vld [vmem:[#allocation8 + $0x18] sm:$0xff]  }
  0xe2   : > { %3135 = vmatpush3.bf16.msra.mxu0 %v3763_v9  ;;  %3367 = vmatpush3.bf16.msra.mxu1 %v3770_v0  ;;  %v3775_v5 = vld [vmem:[#allocation8 + $0x10] sm:$0xff]   ;;  %v3776_v6 = vld [vmem:[#allocation8 + $0x8] sm:$0xff]   ;;  %v3777_v7 = vld [vmem:[#allocation8] sm:$0xff]  }
  0xe3   : > { %3136 = vmatprep.subr.bf16.mxu0 %v3764_v10  ;;  %3368 = vmatprep.subr.bf16.mxu1 %v3771_v1  ;;  %v3778_v8 = vld [vmem:[#allocation10 + $0x38] sm:$0xff]   ;;  %v4815_v11 = vld [vmem:[%s5439_s16] ss:$0 sm:$0xff]  ;;  %v3779_v49 = vld [vmem:[#allocation10 + $0x30] sm:$0xff]   ;;  %s5163_s16 = sshll.u32 %s4522_s2, 11 }
  0xe4   : > { %s5170_s29 = scalar_lea.hbm %s5373_s17, %s5163_s16  ;;  %s5178_s24 = scalar_lea.hbm %s5440_s6, %s5163_s16 }
  0xe6   : > { %3137 = vmatpush3.bf16.msra.mxu0 %v3765_v14  ;;  %3369 = vmatpush3.bf16.msra.mxu1 %v3771_v1 }
  0xe7   : > { %3138 = vmatprep.subr.bf16.mxu0 %v3766_v15  ;;  %3370 = vmatprep.subr.bf16.mxu1 %v3772_v2 }
  0xea   : > { %3139 = vmatpush3.bf16.msra.mxu0 %v3767_v16  ;;  %3371 = vmatpush3.bf16.msra.mxu1 %v3772_v2 }
  0xeb   : > { %3140 = vmatprep.subr.bf16.mxu0 %v3768_v17  ;;  %3372 = vmatprep.subr.bf16.mxu1 %v3773_v3 }
  0xee   : > { %3141 = vmatpush3.bf16.msra.mxu0 %v3769_v18  ;;  %3373 = vmatpush3.bf16.msra.mxu1 %v3773_v3 }
  0xef   : > { %3374 = vmatprep.subr.bf16.mxu1 %v3774_v4 }
  0xf1   : > { %1015 = vmatmul.mubr.bf16.vlgmr.msra.gmra.mxu0 %v831_v23 }
  0xf2   : > { %1022 = vmatprep.mubr.bf16.mxu0 %v834_v24  ;;  %3375 = vmatpush3.bf16.msra.mxu1 %v3774_v4 }
  0xf3   : > { %3376 = vmatprep.subr.bf16.mxu1 %v3775_v5 }
  0xf6   : > { %3377 = vmatpush3.bf16.msra.mxu1 %v3775_v5 }
  0xf7   : > { %3378 = vmatprep.subr.bf16.mxu1 %v3776_v6 }
  0xf9   : > { %1023 = vmatmul.mubr.bf16.gmra.mxu0 %v833_v29 }
  0xfa   : > { %1030 = vmatprep.mubr.bf16.mxu0 %v836_v30  ;;  %3379 = vmatpush3.bf16.msra.mxu1 %v3776_v6 }
  0xfb   : > { %3380 = vmatprep.subr.bf16.mxu1 %v3777_v7 }
  0xfe   : > { %3381 = vmatpush3.bf16.msra.mxu1 %v3777_v7 }
  0xff   : > { %3398 = vmatprep.subr.bf16.mxu1 %v3778_v8 }
 0x101   : > { %1031 = vmatmul.mubr.bf16.gmra.mxu0 %v835_v35 }
 0x102   : > { %1038 = vmatprep.mubr.bf16.mxu0 %v838_v36 }
 0x109   : > { %1039 = vmatmul.mubr.bf16.gmra.mxu0 %v837_v41 }
 0x10a   : > { %1046 = vmatprep.mubr.bf16.mxu0 %v840_v42 }
 0x111   : > { %1047 = vmatmul.mubr.bf16.gmra.mxu0 %v839_v47 }
 0x112   : > { %1054 = vmatprep.mubr.bf16.mxu0 %v842_v48 }
 0x119   : > { %1055 = vmatmul.mubr.bf16.gmra.mxu0 %v841_v53 }
 0x11a   : > { %1062 = vmatprep.mubr.bf16.mxu0 %v844_v54 }
 0x121   : > { %1063 = vmatmul.mubr.bf16.gmra.mxu0 %v843_v59 }
 0x122   : > { %1070 = vmatprep.mubr.bf16.mxu0 %v846_v60 }
 0x129   : > { %1071 = vmatmul.mubr.bf16.gmra.mxu0 %v845_v63 }
 0x1b1   : > { %v3142_v9 = vpop.f32.mrf.mxu0 }
 0x1b3   : > { %v3143_v10 = vpop.f32.mrf.mxu0 }
 0x1b4   : > { %v3144_v12 = vadd.f32 %v3143_v10, %v3142_v9 }
 0x1b5   : > { %v3145_v13 = vpop.f32.mrf.mxu0 }
 0x1b6   : > { %v1017_v14 = vadd.f32 %v3144_v12, %v4815_v11 }
 0x1b7   : > { %v3146_v15 = vpop.f32.mrf.mxu0 }
 0x1b8   : > { %v3147_v16 = vadd.f32 %v3146_v15, %v3145_v13  ;;  %3834 = vtanh.f32 %v1017_v14 }
 0x1b9   : > { %v3148_v17 = vpop.f32.mrf.mxu0 }
 0x1ba   : > { %v1020_v18 = vadd.f32 %v3147_v16, %v4815_v11 }
 0x1bb   : > { %v3149_v19 = vpop.f32.mrf.mxu0 }
 0x1bc   : > { %3836 = vtanh.f32 %v1020_v18  ;;  %v3150_v20 = vadd.f32 %v3149_v19, %v3148_v17 }
 0x1bd   : > { %v3151_v21 = vpop.f32.mrf.mxu0 }
 0x1be   : > { %v1025_v22 = vadd.f32 %v3150_v20, %v4815_v11 }
 0x1bf   : > { %v3152_v23 = vpop.f32.mrf.mxu0 }
 0x1c0   : > { %v3153_v24 = vadd.f32 %v3152_v23, %v3151_v21  ;;  %3838 = vtanh.f32 %v1025_v22 }
 0x1c1   : > { %v3154_v25 = vpop.f32.mrf.mxu0 }
 0x1c2   : > { %v1028_v26 = vadd.f32 %v3153_v24, %v4815_v11 }
 0x1c3   : > { %v3155_v27 = vpop.f32.mrf.mxu0 }
 0x1c4   : > { %3840 = vtanh.f32 %v1028_v26  ;;  %v3156_v28 = vadd.f32 %v3155_v27, %v3154_v25 }
 0x1c5   : > { %v3157_v29 = vpop.f32.mrf.mxu0  ;;  %v3835_v32 = vpop.eup %3834 }
 0x1c6   : > { %v1033_v30 = vadd.f32 %v3156_v28, %v4815_v11 }
 0x1c7   : > { %v3158_v31 = vpop.f32.mrf.mxu0 }
 0x1c8   : > { %v3159_v33 = vadd.f32 %v3158_v31, %v3157_v29  ;;  %3842 = vtanh.f32 %v1033_v30 }
 0x1c9   : > { %v3837_v34 = vpop.eup %3836  ;;  %v3160_v35 = vpop.f32.mrf.mxu0 }
 0x1ca   : > { %v1036_v36 = vadd.f32 %v3159_v33, %v4815_v11  ;;  %v1095_v37 = vpack.c.bf16 %v3837_v34, %v3835_v32 }
 0x1cb   : > { %v3161_v38 = vpop.f32.mrf.mxu0 }
 0x1cc   : > { %3844 = vtanh.f32 %v1036_v36  ;;  %v3162_v39 = vadd.f32 %v3161_v38, %v3160_v35  ;;  %3382 = vmatprep.mubr.bf16.mxu1 %v1095_v37  ;;  %v3780_v36 = vld [vmem:[#allocation10 + $0x28] sm:$0xff]   ;;  %v3781_v37 = vld [vmem:[#allocation10 + $0x20] sm:$0xff]   ;;  %v3782_v38 = vld [vmem:[#allocation10 + $0x18] sm:$0xff]  }
 0x1cd   : > { %v3163_v40 = vpop.f32.mrf.mxu0  ;;  %v3839_v43 = vpop.eup %3838 }
 0x1ce   : > { %v1041_v41 = vadd.f32 %v3162_v39, %v4815_v11  ;;  %v3784_v39 = vld [vmem:[#allocation10 + $0x8] sm:$0xff]  }
 0x1cf   : > { %v3164_v42 = vpop.f32.mrf.mxu0 }
 0x1d0   : > { %v3165_v44 = vadd.f32 %v3164_v42, %v3163_v40  ;;  %3846 = vtanh.f32 %v1041_v41  ;;  %v3785_v40 = vld [vmem:[#allocation10] sm:$0xff]   ;;  %v4833_v41 = vld [vmem:[#allocation16 + $0x38] sm:$0xff]   ;;  %v3787_v42 = vld [vmem:[#allocation16 + $0x30] sm:$0xff]  }
 0x1d1   : > { %v3841_v45 = vpop.eup %3840  ;;  %v3166_v46 = vpop.f32.mrf.mxu0  ;;  %3430 = vmatprep.subr.bf16.mxu0 %v4833_v41 }
 0x1d2   : > { %v1044_v47 = vadd.f32 %v3165_v44, %v4815_v11  ;;  %v1096_v48 = vpack.c.bf16 %v3841_v45, %v3839_v43  ;;  %v3790_v43 = vld [vmem:[#allocation11 + $0x78] sm:$0xff]   ;;  %3431 = vmatpush3.bf16.msra.mxu0 %v4833_v41  ;;  %v3788_v44 = vld [vmem:[#allocation16 + $0x28] sm:$0xff]   ;;  %v3789_v45 = vld [vmem:[#allocation16 + $0x20] sm:$0xff]  }
 0x1d3   : > { %v3167_v50 = vpop.f32.mrf.mxu0  ;;  %3432 = vmatprep.subr.bf16.mxu0 %v3787_v42 }
 0x1d4   : > { %3848 = vtanh.f32 %v1044_v47  ;;  %v3168_v51 = vadd.f32 %v3167_v50, %v3166_v46  ;;  %3383 = vmatmul.mubr.bf16.vlgmr.msra.gmra.mxu1 %v1096_v48  ;;  %v3791_v46 = vld [vmem:[#allocation16 + $0x18] sm:$0xff]   ;;  %v4840_v48 = vld [vmem:[%s5361_s5] ss:$0 sm:$0xff] }
 0x1d5   : > { %v3169_v52 = vpop.f32.mrf.mxu0  ;;  %3399 = vmatpush3.bf16.msra.mxu1 %v3778_v8  ;;  %v3843_v55 = vpop.eup %3842 }
 0x1d6   : > { %3400 = vmatprep.subr.bf16.mxu1 %v3779_v49  ;;  %v1049_v53 = vadd.f32 %v3168_v51, %v4815_v11  ;;  %3433 = vmatpush3.bf16.msra.mxu0 %v3787_v42 }
 0x1d7   : > { %v3170_v54 = vpop.f32.mrf.mxu0  ;;  %3434 = vmatprep.subr.bf16.mxu0 %v3788_v44 }
 0x1d8   : > { %v3171_v56 = vadd.f32 %v3170_v54, %v3169_v52  ;;  %3850 = vtanh.f32 %v1049_v53 }
 0x1d9   : > { %v3845_v57 = vpop.eup %3844  ;;  %v3172_v58 = vpop.f32.mrf.mxu0  ;;  %3401 = vmatpush3.bf16.msra.mxu1 %v3779_v49 }
 0x1da   : > { %v1052_v59 = vadd.f32 %v3171_v56, %v4815_v11  ;;  %v1097_v60 = vpack.c.bf16 %v3845_v57, %v3843_v55  ;;  %3402 = vmatprep.subr.bf16.mxu1 %v3780_v36  ;;  %3435 = vmatpush3.bf16.msra.mxu0 %v3788_v44  ;;  %v3795_v44 = vld [vmem:[#allocation11 + $0x30] sm:$0xff]  }
 0x1db   : > { %v3173_v61 = vpop.f32.mrf.mxu0  ;;  %3436 = vmatprep.subr.bf16.mxu0 %v3789_v45 }
 0x1dc   : > { %3852 = vtanh.f32 %v1052_v59  ;;  %v3174_v62 = vadd.f32 %v3173_v61, %v3172_v58  ;;  %3386 = vmatprep.mubr.bf16.mxu1 %v1097_v60 }
 0x1dd   : > { %v3175_v63 = vpop.f32.mrf.mxu0  ;;  %v3847_v2 = vpop.eup %3846  ;;  %3403 = vmatpush3.bf16.msra.mxu1 %v3780_v36 }
 0x1de   : > { %v1057_v0 = vadd.f32 %v3174_v62, %v4815_v11  ;;  %3404 = vmatprep.subr.bf16.mxu1 %v3781_v37  ;;  %3437 = vmatpush3.bf16.msra.mxu0 %v3789_v45  ;;  %v3796_v45 = vld [vmem:[#allocation11 + $0x68] sm:$0xff]  }
 0x1df   : > { %v3176_v1 = vpop.f32.mrf.mxu0  ;;  %3438 = vmatprep.subr.bf16.mxu0 %v3791_v46 }
 0x1e0   : > { %v3177_v3 = vadd.f32 %v3176_v1, %v3175_v63  ;;  %3854 = vtanh.f32 %v1057_v0 }
 0x1e1   : > { %v3849_v4 = vpop.eup %3848  ;;  %v3178_v5 = vpop.f32.mrf.mxu0  ;;  %3405 = vmatpush3.bf16.msra.mxu1 %v3781_v37 }
 0x1e2   : > { %v1060_v6 = vadd.f32 %v3177_v3, %v4815_v11  ;;  %v1098_v7 = vpack.c.bf16 %v3849_v4, %v3847_v2  ;;  %3406 = vmatprep.subr.bf16.mxu1 %v3782_v38  ;;  %3439 = vmatpush3.bf16.msra.mxu0 %v3791_v46  ;;  %v4862_v46 = vld [vmem:[#allocation16 + $0x8] sm:$0xff]  }
 0x1e3   : > { %v3179_v8 = vpop.f32.mrf.mxu0 }
 0x1e4   : > { %3856 = vtanh.f32 %v1060_v6  ;;  %v3180_v9 = vadd.f32 %v3179_v8, %v3178_v5  ;;  %3387 = vmatmul.mubr.bf16.gmra.mxu1 %v1098_v7  ;;  %v3792_v5 = vld [vmem:[#allocation11 + $0x38] sm:$0xff]   ;;  %v3793_v7 = vld [vmem:[#allocation11 + $0x70] sm:$0xff]  }
 0x1e5   : > { %v3181_v10 = vpop.f32.mrf.mxu0  ;;  %v3851_v14 = vpop.eup %3850  ;;  %3407 = vmatpush3.bf16.msra.mxu1 %v3782_v38 }
 0x1e6   : > { %v1065_v12 = vadd.f32 %v3180_v9, %v4815_v11 }
 0x1e7   : > { %v3182_v13 = vpop.f32.mrf.mxu0 }
 0x1e8   : > { %v3183_v15 = vadd.f32 %v3182_v13, %v3181_v10  ;;  %3858 = vtanh.f32 %v1065_v12 }
 0x1e9   : > { %v3853_v16 = vpop.eup %3852  ;;  %v3184_v17 = vpop.f32.mrf.mxu0 }
 0x1ea   : > { %v1068_v18 = vadd.f32 %v3183_v15, %v4815_v11  ;;  %v1099_v19 = vpack.c.bf16 %v3853_v16, %v3851_v14 }
 0x1eb   : > { %v3185_v20 = vpop.f32.mrf.mxu0 }
 0x1ec   : > { %3860 = vtanh.f32 %v1068_v18  ;;  %v3186_v21 = vadd.f32 %v3185_v20, %v3184_v17  ;;  %3390 = vmatprep.mubr.bf16.mxu1 %v1099_v19 }
 0x1ed   : > { %v3187_v22 = vpop.f32.mrf.mxu0  ;;  %v3855_v25 = vpop.eup %3854 }
 0x1ee   : > { %v1073_v23 = vadd.f32 %v3186_v21, %v4815_v11 }
 0x1ef   : > { %v3188_v24 = vpop.f32.mrf.mxu0 }
 0x1f0   : > { %v3189_v26 = vadd.f32 %v3188_v24, %v3187_v22  ;;  %3862 = vtanh.f32 %v1073_v23 }
 0x1f1   : > { %v3857_v27 = vpop.eup %3856 }
 0x1f2   : > { %v1076_v28 = vadd.f32 %v3189_v26, %v4815_v11  ;;  %v1100_v29 = vpack.c.bf16 %v3857_v27, %v3855_v25  ;;  %v3783_v11 = vld [vmem:[#allocation10 + $0x10] sm:$0xff]  }
 0x1f3   : > { %3408 = vmatprep.subr.bf16.mxu1 %v3783_v11 }
 0x1f4   : > { %3864 = vtanh.f32 %v1076_v28  ;;  %3391 = vmatmul.mubr.bf16.gmra.mxu1 %v1100_v29 }
 0x1f5   : > { %v3859_v30 = vpop.eup %3858  ;;  %3409 = vmatpush3.bf16.msra.mxu1 %v3783_v11 }
 0x1f6   : > { %3410 = vmatprep.subr.bf16.mxu1 %v3784_v39 }
 0x1f9   : > { %v3861_v31 = vpop.eup %3860  ;;  %3411 = vmatpush3.bf16.msra.mxu1 %v3784_v39 }
 0x1fa   : > { %v1101_v32 = vpack.c.bf16 %v3861_v31, %v3859_v30  ;;  %3412 = vmatprep.subr.bf16.mxu1 %v3785_v40 }
 0x1fc   : > { %3394 = vmatprep.mubr.bf16.mxu1 %v1101_v32 }
 0x1fd   : > { %v3863_v33 = vpop.eup %3862  ;;  %3413 = vmatpush3.bf16.msra.mxu1 %v3785_v40 }
 0x1fe   : > { %3238 = vmatprep.subr.bf16.mxu1 %v3790_v43  ;;  %v4858_v43 = vld [vmem:[#allocation16 + $0x10] sm:$0xff]  }
 0x1ff   : > { %3440 = vmatprep.subr.bf16.mxu0 %v4858_v43 }
 0x200   : > { %3441 = vmatpush3.bf16.msra.mxu0 %v4858_v43 }
 0x201   : > { %v3865_v34 = vpop.eup %3864  ;;  %3442 = vmatprep.subr.bf16.mxu0 %v4862_v46 }
 0x202   : > { %v1102_v35 = vpack.c.bf16 %v3865_v34, %v3863_v33 }
 0x204   : > { %3395 = vmatmul.mubr.bf16.gmra.mxu1 %v1102_v35  ;;  %3443 = vmatpush3.bf16.msra.mxu0 %v4862_v46 }
 0x294   : > { %v3384_v47 = vpop.f32.mrf.mxu1 }
 0x295   : > { %v1217_v53 = vadd.f32 %v3384_v47, %v4840_v48  ;;  %v3798_v47 = vld [vmem:[#allocation11 + $0x28] sm:$0xff]  }
 0x296   : > { %v1208_v49 = vpop.f32.mrf.mxu1 }
 0x297   : > { %v1209_v50 = vadd.f32 %v4840_v48, %v1208_v49  ;;  %v4866_v49 = vld [vmem:[#allocation16] sm:$0xff]  }
 0x298   : > { %v3385_v51 = vpop.f32.mrf.mxu1  ;;  %3444 = vmatprep.subr.bf16.mxu0 %v4866_v49 }
 0x299   : > { %v1220_v52 = vadd.f32 %v3385_v51, %v4840_v48  ;;  %3866 = vtanh.f32 %v1209_v50  ;;  %v3801_v50 = vld [vmem:[#allocation11 + $0x20] sm:$0xff]   ;;  %3445 = vmatpush3.bf16.msra.mxu0 %v4866_v49  ;;  %v3802_v51 = vld [vmem:[#allocation11 + $0x58] sm:$0xff]  }
 0x29a   : > { %v1211_v54 = vpop.f32.mrf.mxu1 }
 0x29b   : > { %v1212_v55 = vadd.f32 %v4840_v48, %v1211_v54  ;;  %3868 = vtanh.f32 %v1220_v52  ;;  %v3803_v52 = vld [vmem:[#allocation11 + $0x18] sm:$0xff]   ;;  %v3805_v54 = vld [vmem:[#allocation11 + $0x10] sm:$0xff]  }
 0x29d   : > { %3870 = vtanh.f32 %v1212_v55  ;;  %v3806_v55 = vld [vmem:[#allocation11 + $0x48] sm:$0xff]  }
 0x29e   : > { %3872 = vtanh.f32 %v1217_v53  ;;  %v3804_v53 = vld [vmem:[#allocation11 + $0x50] sm:$0xff]  }
 0x2a4   : > { %v3388_v56 = vpop.f32.mrf.mxu1 }
 0x2a5   : > { %v1233_v0 = vadd.f32 %v3388_v56, %v4840_v48  ;;  %v3807_v56 = vld [vmem:[#allocation11 + $0x8] sm:$0xff]  }
 0x2a6   : > { %v1224_v57 = vpop.f32.mrf.mxu1  ;;  %v3867_v59 = vpop.eup %3866 }
 0x2a7   : > { %v1225_v58 = vadd.f32 %v4840_v48, %v1224_v57  ;;  %v3808_v57 = vld [vmem:[#allocation11 + $0x40] sm:$0xff]  }
 0x2a8   : > { %v3389_v60 = vpop.f32.mrf.mxu1  ;;  %v3869_v61 = vpop.eup %3868 }
 0x2a9   : > { %v1236_v62 = vadd.f32 %v3389_v60, %v4840_v48  ;;  %3874 = vtanh.f32 %v1225_v58  ;;  %v3809_v58 = vld [vmem:[#allocation11] sm:$0xff]  }
 0x2aa   : > { %v3871_v63 = vpop.eup %3870  ;;  %v1227_v1 = vpop.f32.mrf.mxu1  ;;  %v1643_v60 = vld [vmem:[%s4758_s27 + $0x20] sm:$0xff] }
 0x2ab   : > { %v3873_v2 = vpop.eup %3872  ;;  %v1228_v3 = vadd.f32 %v4840_v48, %v1227_v1  ;;  %v1287_v4 = vpack.c.bf16 %v3871_v63, %v3867_v59  ;;  %3876 = vtanh.f32 %v1236_v62  ;;  %v1640_v59 = vld [vmem:[%s4758_s27 + $0x8] sm:$0xff]  ;;  %v1639_v62 = vld [vmem:[%s4758_s27] sm:$0xff]  ;;  %v1642_v63 = vld [vmem:[%s4758_s27 + $0x18] sm:$0xff] }
 0x2ac   : > { %v1288_v6 = vpack.c.bf16 %v3869_v61, %v3873_v2  ;;  %v1688_v61 = vpack.c.bf16 %v1643_v60, %v1640_v59  ;;  %v1646_v1 = vld [vmem:[%s4758_s27 + $0x38] sm:$0xff]  ;;  %v1649_v2 = vld [vmem:[%s4758_s27 + $0x50] sm:$0xff]  ;;  %v3812_v60 = vld [vmem:[#allocation11 + $0xa8] sm:$0xff]  }
 0x2ad   : > { %3878 = vtanh.f32 %v1228_v3  ;;  %3414 = vmatprep.mubr.bf16.mxu1 %v1287_v4  ;;  %v1691_v3 = vpack.c.bf16 %v1649_v2, %v1646_v1  ;;  %v1645_v4 = vld [vmem:[%s4758_s27 + $0x30] sm:$0xff] }
 0x2ae   : > { %3880 = vtanh.f32 %v1233_v0  ;;  %3415 = vmatmul.mubr.bf16.vlgmr.msra.gmra.mxu1 %v1288_v6  ;;  %v1687_v0 = vpack.c.bf16 %v1642_v63, %v1639_v62  ;;  %v3811_v59 = vld [vmem:[#allocation11 + $0xb0] sm:$0xff]  }
 0x2af   : > { %3239 = vmatpush3.bf16.msra.mxu1 %v3792_v5  ;;  %v1648_v5 = vld [vmem:[%s4758_s27 + $0x48] sm:$0xff] }
 0x2b0   : > { %3240 = vmatprep.subr.bf16.mxu1 %v3793_v7  ;;  %v1690_v6 = vpack.c.bf16 %v1648_v5, %v1645_v4  ;;  %v4878_v7 = vld [vmem:[#allocation11 + $0xb8] sm:$0xff]  }
 0x2b1   : > { %3462 = vmatprep.subr.bf16.mxu0 %v4878_v7  ;;  %v3814_v5 = vld [vmem:[#allocation11 + $0x98] sm:$0xff]  }
 0x2b3   : > { %3241 = vmatpush3.bf16.msra.mxu1 %v3795_v44  ;;  %v1684_v44 = vld [vmem:[%s4758_s27 + $0x168] sm:$0xff] }
 0x2b4   : > { %v3392_v8 = vpop.f32.mrf.mxu1  ;;  %3242 = vmatprep.subr.bf16.mxu1 %v3796_v45 }
 0x2b5   : > { %v1249_v17 = vadd.f32 %v3392_v8, %v4840_v48  ;;  %v1652_v8 = vld [vmem:[%s4758_s27 + $0x68] sm:$0xff] }
 0x2b6   : > { %v1240_v9 = vpop.f32.mrf.mxu1  ;;  %v3875_v12 = vpop.eup %3874 }
 0x2b7   : > { %v1241_v10 = vadd.f32 %v4840_v48, %v1240_v9  ;;  %3243 = vmatpush3.bf16.msra.mxu1 %v3798_v47  ;;  %v1655_v9 = vld [vmem:[%s4758_s27 + $0x80] sm:$0xff] }
 0x2b8   : > { %v3393_v13 = vpop.f32.mrf.mxu1  ;;  %v3877_v14 = vpop.eup %3876  ;;  %v4911_v47 = vld [vmem:[%s5363_s7] ss:$0 sm:$0xff] }
 0x2b9   : > { %v1252_v15 = vadd.f32 %v3393_v13, %v4840_v48  ;;  %3882 = vtanh.f32 %v1241_v10  ;;  %v1694_v10 = vpack.c.bf16 %v1655_v9, %v1652_v8  ;;  %v1654_v13 = vld [vmem:[%s4758_s27 + $0x78] sm:$0xff]  ;;  %v3815_v9 = vld [vmem:[#allocation11 + $0x90] sm:$0xff]  }
 0x2ba   : > { %v3879_v16 = vpop.eup %3878  ;;  %v1243_v18 = vpop.f32.mrf.mxu1 }
 0x2bb   : > { %v3881_v19 = vpop.eup %3880  ;;  %v1244_v20 = vadd.f32 %v4840_v48, %v1243_v18  ;;  %v1289_v21 = vpack.c.bf16 %v3879_v16, %v3875_v12  ;;  %3884 = vtanh.f32 %v1252_v15  ;;  %v1651_v12 = vld [vmem:[%s4758_s27 + $0x60] sm:$0xff]  ;;  %v1658_v15 = vld [vmem:[%s4758_s27 + $0x98] sm:$0xff]  ;;  %v1661_v16 = vld [vmem:[%s4758_s27 + $0xb0] sm:$0xff] }
 0x2bc   : > { %v1290_v22 = vpack.c.bf16 %v3877_v14, %v3881_v19  ;;  %v1693_v14 = vpack.c.bf16 %v1654_v13, %v1651_v12  ;;  %v1657_v18 = vld [vmem:[%s4758_s27 + $0x90] sm:$0xff]  ;;  %v1660_v19 = vld [vmem:[%s4758_s27 + $0xa8] sm:$0xff] }
 0x2bd   : > { %3886 = vtanh.f32 %v1244_v20  ;;  %3418 = vmatprep.mubr.bf16.mxu1 %v1289_v21  ;;  %v1696_v20 = vpack.c.bf16 %v1660_v19, %v1657_v18  ;;  %v1664_v21 = vld [vmem:[%s4758_s27 + $0xc8] sm:$0xff] }
 0x2be   : > { %3888 = vtanh.f32 %v1249_v17  ;;  %3419 = vmatmul.mubr.bf16.gmra.mxu1 %v1290_v22  ;;  %v1697_v17 = vpack.c.bf16 %v1661_v16, %v1658_v15  ;;  %v1667_v22 = vld [vmem:[%s4758_s27 + $0xe0] sm:$0xff] }
 0x2bf   : > { %v3817_v15 = vld [vmem:[#allocation11 + $0x80] sm:$0xff]  }
 0x2c4   : > { %v3396_v23 = vpop.f32.mrf.mxu1 }
 0x2c5   : > { %v1265_v31 = vadd.f32 %v3396_v23, %v4840_v48  ;;  %v1700_v23 = vpack.c.bf16 %v1667_v22, %v1664_v21 }
 0x2c6   : > { %v1256_v24 = vpop.f32.mrf.mxu1  ;;  %v3883_v26 = vpop.eup %3882 }
 0x2c7   : > { %v1257_v25 = vadd.f32 %v4840_v48, %v1256_v24  ;;  %v1663_v24 = vld [vmem:[%s4758_s27 + $0xc0] sm:$0xff] }
 0x2c8   : > { %v3397_v27 = vpop.f32.mrf.mxu1  ;;  %v3885_v28 = vpop.eup %3884 }
 0x2c9   : > { %v1268_v29 = vadd.f32 %v3397_v27, %v4840_v48  ;;  %3890 = vtanh.f32 %v1257_v25  ;;  %v1666_v25 = vld [vmem:[%s4758_s27 + $0xd8] sm:$0xff] }
 0x2ca   : > { %v3887_v30 = vpop.eup %3886  ;;  %v1259_v32 = vpop.f32.mrf.mxu1  ;;  %v1670_v27 = vld [vmem:[%s4758_s27 + $0xf8] sm:$0xff] }
 0x2cb   : > { %v3889_v33 = vpop.eup %3888  ;;  %v1260_v34 = vadd.f32 %v4840_v48, %v1259_v32  ;;  %v1291_v35 = vpack.c.bf16 %v3887_v30, %v3883_v26  ;;  %3892 = vtanh.f32 %v1268_v29  ;;  %v3799_v48 = vld [vmem:[#allocation11 + $0x60] sm:$0xff]   ;;  %v1699_v26 = vpack.c.bf16 %v1666_v25, %v1663_v24  ;;  %v1669_v30 = vld [vmem:[%s4758_s27 + $0xf0] sm:$0xff] }
 0x2cc   : > { %v1292_v36 = vpack.c.bf16 %v3885_v28, %v3889_v33  ;;  %3244 = vmatprep.subr.bf16.mxu1 %v3799_v48  ;;  %v1673_v28 = vld [vmem:[%s4758_s27 + $0x110] sm:$0xff]  ;;  %v1676_v33 = vld [vmem:[%s4758_s27 + $0x128] sm:$0xff] }
 0x2cd   : > { %3894 = vtanh.f32 %v1260_v34  ;;  %3422 = vmatprep.mubr.bf16.mxu1 %v1291_v35  ;;  %3245 = vmatpush3.bf16.msra.mxu1 %v3801_v50  ;;  %v1703_v29 = vpack.c.bf16 %v1673_v28, %v1670_v27  ;;  %v1679_v34 = vld [vmem:[%s4758_s27 + $0x140] sm:$0xff] }
 0x2ce   : > { %3896 = vtanh.f32 %v1265_v31  ;;  %3423 = vmatmul.mubr.bf16.gmra.mxu1 %v1292_v36  ;;  %3246 = vmatprep.subr.bf16.mxu1 %v3802_v51  ;;  %v1672_v31 = vld [vmem:[%s4758_s27 + $0x108] sm:$0xff]  ;;  %v1675_v35 = vld [vmem:[%s4758_s27 + $0x120] sm:$0xff]  ;;  %v1706_v36 = vpack.c.bf16 %v1679_v34, %v1676_v33 }
 0x2cf   : > { %v1702_v32 = vpack.c.bf16 %v1672_v31, %v1669_v30  ;;  %v1641_v30 = vld [vmem:[%s4758_s27 + $0x10] sm:$0xff]  ;;  %v1644_v31 = vld [vmem:[%s4758_s27 + $0x28] sm:$0xff] }
 0x2d0   : > { %v1689_v34 = vpack.c.bf16 %v1644_v31, %v1641_v30 }
 0x2d1   : > { %3247 = vmatpush3.bf16.msra.mxu1 %v3803_v52 }
 0x2d2   : > { %3248 = vmatprep.subr.bf16.mxu1 %v3804_v53 }
 0x2d5   : > { %3249 = vmatpush3.bf16.msra.mxu1 %v3805_v54 }
 0x2d6   : > { %v3891_v37 = vpop.eup %3890  ;;  %3250 = vmatprep.subr.bf16.mxu1 %v3806_v55 }
 0x2d8   : > { %v3893_v38 = vpop.eup %3892 }
 0x2d9   : > { %3251 = vmatpush3.bf16.msra.mxu1 %v3807_v56 }
 0x2da   : > { %v3895_v11 = vpop.eup %3894  ;;  %3252 = vmatprep.subr.bf16.mxu1 %v3808_v57 }
 0x2db   : > { %v3897_v39 = vpop.eup %3896  ;;  %v1293_v40 = vpack.c.bf16 %v3895_v11, %v3891_v37  ;;  %v1678_v37 = vld [vmem:[%s4758_s27 + $0x138] sm:$0xff] }
 0x2dc   : > { %v1294_v42 = vpack.c.bf16 %v3893_v38, %v3897_v39  ;;  %v1705_v38 = vpack.c.bf16 %v1678_v37, %v1675_v35  ;;  %v1682_v11 = vld [vmem:[%s4758_s27 + $0x158] sm:$0xff]  ;;  %v1685_v39 = vld [vmem:[%s4758_s27 + $0x170] sm:$0xff] }
 0x2dd   : > { %3426 = vmatprep.mubr.bf16.mxu1 %v1293_v40  ;;  %3253 = vmatpush3.bf16.msra.mxu1 %v3809_v58  ;;  %v1681_v40 = vld [vmem:[%s4758_s27 + $0x150] sm:$0xff]  ;;  %v1650_v37 = vld [vmem:[%s4758_s27 + $0x58] sm:$0xff] }
 0x2de   : > { %3427 = vmatmul.mubr.bf16.gmra.mxu1 %v1294_v42  ;;  %v1709_v42 = vpack.c.bf16 %v1685_v39, %v1682_v11  ;;  %v1708_v45 = vpack.c.bf16 %v1684_v44, %v1681_v40  ;;  %v1656_v11 = vld [vmem:[%s4758_s27 + $0x88] sm:$0xff]  ;;  %v1662_v44 = vld [vmem:[%s4758_s27 + $0xb8] sm:$0xff] }
 0x2df   : > { %1942 = vmatprep.mubr.bf16.mxu1 %v1688_v61 }
 0x2e6   : > { %1943 = vmatmul.mubr.bf16.vlgmr.msra.gmra.mxu1 %v1687_v0  ;;  %v3813_v0 = vld [vmem:[#allocation11 + $0xa0] sm:$0xff]  }
 0x2e7   : > { %1950 = vmatprep.mubr.bf16.mxu1 %v1691_v3 }
 0x2ee   : > { %1951 = vmatmul.mubr.bf16.gmra.mxu1 %v1690_v6 }
 0x2ef   : > { %1958 = vmatprep.mubr.bf16.mxu1 %v1694_v10  ;;  %v3816_v10 = vld [vmem:[#allocation11 + $0x88] sm:$0xff]  }
 0x2f6   : > { %1959 = vmatmul.mubr.bf16.gmra.mxu1 %v1693_v14 }
 0x2f7   : > { %1966 = vmatprep.mubr.bf16.mxu1 %v1697_v17 }
 0x2fe   : > { %1967 = vmatmul.mubr.bf16.gmra.mxu1 %v1696_v20 }
 0x2ff   : > { %1974 = vmatprep.mubr.bf16.mxu1 %v1700_v23 }
 0x306   : > { %1975 = vmatmul.mubr.bf16.gmra.mxu1 %v1699_v26 }
 0x307   : > { %1982 = vmatprep.mubr.bf16.mxu1 %v1703_v29 }
 0x30e   : > { %1983 = vmatmul.mubr.bf16.gmra.mxu1 %v1702_v32 }
 0x30f   : > { %1990 = vmatprep.mubr.bf16.mxu1 %v1706_v36  ;;  %v1647_v36 = vld [vmem:[%s4758_s27 + $0x40] sm:$0xff] }
 0x310   : > { %v1692_v39 = vpack.c.bf16 %v1650_v37, %v1647_v36 }
 0x316   : > { %1991 = vmatmul.mubr.bf16.gmra.mxu1 %v1705_v38  ;;  %v1653_v38 = vld [vmem:[%s4758_s27 + $0x70] sm:$0xff] }
 0x317   : > { %1998 = vmatprep.mubr.bf16.mxu1 %v1709_v42  ;;  %v1695_v40 = vpack.c.bf16 %v1656_v11, %v1653_v38  ;;  %v1659_v42 = vld [vmem:[%s4758_s27 + $0xa0] sm:$0xff] }
 0x31e   : > { %1999 = vmatmul.mubr.bf16.gmra.mxu1 %v1708_v45  ;;  %v1665_v45 = vld [vmem:[%s4758_s27 + $0xd0] sm:$0xff] }
 0x36e   : > { %v3416_v48 = vpop.f32.mrf.mxu1 }
 0x36f   : > { %v1409_v50 = vadd.f32 %v3416_v48, %v4911_v47  ;;  %v1698_v48 = vpack.c.bf16 %v1662_v44, %v1659_v42 }
 0x370   : > { %v1400_v51 = vpop.f32.mrf.mxu1 }
 0x371   : > { %2595 = vst [vmem:[%s4915_s25 + $0x10] sm:$0xff] %v1409_v50  ;;  %v1401_v52 = vadd.f32 %v4911_v47, %v1400_v51  ;;  %v1671_v51 = vld [vmem:[%s4758_s27 + $0x100] sm:$0xff] }
 0x372   : > { %v3417_v53 = vpop.f32.mrf.mxu1 }
 0x373   : > { %2593 = vst [vmem:[%s4915_s25] sm:$0xff] %v1401_v52  ;;  %v1412_v54 = vadd.f32 %v3417_v53, %v4911_v47  ;;  %v1677_v53 = vld [vmem:[%s4758_s27 + $0x130] sm:$0xff] }
 0x374   : > { %v1403_v55 = vpop.f32.mrf.mxu1 }
 0x375   : > { %2596 = vst [vmem:[%s4915_s25 + $0x18] sm:$0xff] %v1412_v54  ;;  %v1404_v56 = vadd.f32 %v4911_v47, %v1403_v55  ;;  %v1464_v58 = vpack.c.bf16 %v1412_v54, %v1409_v50  ;;  %v1680_v54 = vld [vmem:[%s4758_s27 + $0x148] sm:$0xff] }
 0x377   : > { %v1463_v57 = vpack.c.bf16 %v1404_v56, %v1401_v52  ;;  %2594 = vst [vmem:[%s4915_s25 + $0x8] sm:$0xff] %v1404_v56  ;;  %v1674_v52 = vld [vmem:[%s4758_s27 + $0x118] sm:$0xff]  ;;  %v1707_v56 = vpack.c.bf16 %v1680_v54, %v1677_v53 }
 0x378   : > { %v1704_v55 = vpack.c.bf16 %v1674_v52, %v1671_v51 }
 0x379   : > { %3446 = vmatprep.mubr.bf16.mxu0 %v1463_v57  ;;  %v1683_v57 = vld [vmem:[%s4758_s27 + $0x160] sm:$0xff] }
 0x37a   : > { %3447 = vmatmul.mubr.bf16.vlgmr.msra.gmra.mxu0 %v1464_v58  ;;  %v1686_v58 = vld [vmem:[%s4758_s27 + $0x178] sm:$0xff] }
 0x37b   : > { %3463 = vmatpush3.bf16.msra.mxu0 %v4878_v7 }
 0x37c   : > { %3464 = vmatprep.subr.bf16.mxu0 %v3811_v59 }
 0x37e   : > { %v3420_v61 = vpop.f32.mrf.mxu1 }
 0x37f   : > { %v1425_v62 = vadd.f32 %v3420_v61, %v4911_v47  ;;  %3465 = vmatpush3.bf16.msra.mxu0 %v3811_v59  ;;  %v1710_v59 = vpack.c.bf16 %v1686_v58, %v1683_v57  ;;  %v3819_v61 = vld [vmem:[#allocation13 + $0x30] sm:$0xff]  }
 0x380   : > { %v1416_v63 = vpop.f32.mrf.mxu1  ;;  %3466 = vmatprep.subr.bf16.mxu0 %v3812_v60 }
 0x381   : > { %2599 = vst [vmem:[%s4915_s25 + $0x30] sm:$0xff] %v1425_v62  ;;  %v1417_v1 = vadd.f32 %v4911_v47, %v1416_v63  ;;  %v3821_v63 = vld [vmem:[#allocation13 + $0x20] sm:$0xff]  }
 0x382   : > { %v3421_v2 = vpop.f32.mrf.mxu1 }
 0x383   : > { %2597 = vst [vmem:[%s4915_s25 + $0x20] sm:$0xff] %v1417_v1  ;;  %v1428_v3 = vadd.f32 %v3421_v2, %v4911_v47  ;;  %3467 = vmatpush3.bf16.msra.mxu0 %v3812_v60  ;;  %v3818_v60 = vld [vmem:[#allocation13 + $0x38] sm:$0xff]   ;;  %v3824_v2 = vld [vmem:[#allocation13 + $0x8] sm:$0xff]  }
 0x384   : > { %v1419_v4 = vpop.f32.mrf.mxu1  ;;  %3468 = vmatprep.subr.bf16.mxu0 %v3813_v0 }
 0x385   : > { %2600 = vst [vmem:[%s4915_s25 + $0x38] sm:$0xff] %v1428_v3  ;;  %v1420_v6 = vadd.f32 %v4911_v47, %v1419_v4  ;;  %v1466_v8 = vpack.c.bf16 %v1428_v3, %v1425_v62  ;;  %v3820_v62 = vld [vmem:[#allocation13 + $0x28] sm:$0xff]   ;;  %v3825_v3 = vld [vmem:[#allocation13] sm:$0xff]  }
 0x387   : > { %v1465_v7 = vpack.c.bf16 %v1420_v6, %v1417_v1  ;;  %2598 = vst [vmem:[%s4915_s25 + $0x28] sm:$0xff] %v1420_v6  ;;  %3469 = vmatpush3.bf16.msra.mxu0 %v3813_v0  ;;  %v3822_v0 = vld [vmem:[#allocation13 + $0x18] sm:$0xff]   ;;  %v3823_v1 = vld [vmem:[#allocation13 + $0x10] sm:$0xff]  }
 0x388   : > { %3470 = vmatprep.subr.bf16.mxu0 %v3814_v5 }
 0x389   : > { %3450 = vmatprep.mubr.bf16.mxu0 %v1465_v7 }
 0x38a   : > { %3451 = vmatmul.mubr.bf16.gmra.mxu0 %v1466_v8 }
 0x38b   : > { %3471 = vmatpush3.bf16.msra.mxu0 %v3814_v5 }
 0x38c   : > { %3472 = vmatprep.subr.bf16.mxu0 %v3815_v9 }
 0x38e   : > { %v3424_v12 = vpop.f32.mrf.mxu1 }
 0x38f   : > { %v1441_v13 = vadd.f32 %v3424_v12, %v4911_v47  ;;  %3473 = vmatpush3.bf16.msra.mxu0 %v3815_v9  ;;  %v3826_v12 = vld [vmem:[#allocation14 + $0x38] sm:$0xff]  }
 0x390   : > { %v1432_v14 = vpop.f32.mrf.mxu1  ;;  %3474 = vmatprep.subr.bf16.mxu0 %v3816_v10  ;;  %3526 = vmatprep.subr.bf16.mxu1 %v3826_v12 }
 0x391   : > { %2603 = vst [vmem:[%s4915_s25 + $0x50] sm:$0xff] %v1441_v13  ;;  %v1433_v16 = vadd.f32 %v4911_v47, %v1432_v14  ;;  %3527 = vmatpush3.bf16.msra.mxu1 %v3826_v12 }
 0x392   : > { %v3425_v17 = vpop.f32.mrf.mxu1 }
 0x393   : > { %2601 = vst [vmem:[%s4915_s25 + $0x40] sm:$0xff] %v1433_v16  ;;  %v1444_v18 = vadd.f32 %v3425_v17, %v4911_v47  ;;  %3475 = vmatpush3.bf16.msra.mxu0 %v3816_v10 }
 0x394   : > { %v1435_v19 = vpop.f32.mrf.mxu1  ;;  %3476 = vmatprep.subr.bf16.mxu0 %v3817_v15 }
 0x395   : > { %2604 = vst [vmem:[%s4915_s25 + $0x58] sm:$0xff] %v1444_v18  ;;  %v1436_v20 = vadd.f32 %v4911_v47, %v1435_v19  ;;  %v1468_v22 = vpack.c.bf16 %v1444_v18, %v1441_v13  ;;  %v3827_v13 = vld [vmem:[#allocation14 + $0x30] sm:$0xff]   ;;  %v3830_v18 = vld [vmem:[#allocation14 + $0x18] sm:$0xff]  }
 0x396   : > { %3528 = vmatprep.subr.bf16.mxu1 %v3827_v13 }
 0x397   : > { %v1467_v21 = vpack.c.bf16 %v1436_v20, %v1433_v16  ;;  %2602 = vst [vmem:[%s4915_s25 + $0x48] sm:$0xff] %v1436_v20  ;;  %3477 = vmatpush3.bf16.msra.mxu0 %v3817_v15  ;;  %3529 = vmatpush3.bf16.msra.mxu1 %v3827_v13  ;;  %v3829_v16 = vld [vmem:[#allocation14 + $0x20] sm:$0xff]  }
 0x398   : > { %3494 = vmatprep.subr.bf16.mxu0 %v3818_v60 }
 0x399   : > { %3454 = vmatprep.mubr.bf16.mxu0 %v1467_v21  ;;  %v4993_v21 = vld [vmem:[%s5371_s15] ss:$0 sm:$0xff] }
 0x39a   : > { %3455 = vmatmul.mubr.bf16.gmra.mxu0 %v1468_v22 }
 0x39e   : > { %v3428_v23 = vpop.f32.mrf.mxu1 }
 0x39f   : > { %v1457_v24 = vadd.f32 %v3428_v23, %v4911_v47 }
 0x3a0   : > { %v1448_v25 = vpop.f32.mrf.mxu1 }
 0x3a1   : > { %2607 = vst [vmem:[%s4915_s25 + $0x70] sm:$0xff] %v1457_v24  ;;  %v1449_v26 = vadd.f32 %v4911_v47, %v1448_v25 }
 0x3a2   : > { %v3429_v27 = vpop.f32.mrf.mxu1 }
 0x3a3   : > { %2605 = vst [vmem:[%s4915_s25 + $0x60] sm:$0xff] %v1449_v26  ;;  %v1460_v28 = vadd.f32 %v3429_v27, %v4911_v47 }
 0x3a4   : > { %v1451_v29 = vpop.f32.mrf.mxu1 }
 0x3a5   : > { %2608 = vst [vmem:[%s4915_s25 + $0x78] sm:$0xff] %v1460_v28  ;;  %v1452_v32 = vadd.f32 %v4911_v47, %v1451_v29  ;;  %v1470_v35 = vpack.c.bf16 %v1460_v28, %v1457_v24  ;;  %v1668_v47 = vld [vmem:[%s4758_s27 + $0xe8] sm:$0xff]  ;;  %s4395_s27 = smov [#allocation18]  }
 0x3a6   : > { %v1701_v50 = vpack.c.bf16 %v1668_v47, %v1665_v45  ;;  %v4965_v4 = vpop.f32.mrf.mxu1  ;;  %s4212_s19 = sshll.u32 %s4395_s27, 4  ;;  %s4213_s19 = int_to_ptr.vmem [resolvable:$false] %s4212_s19 }
 0x3a7   : > { %v1469_v33 = vpack.c.bf16 %v1452_v32, %v1449_v26  ;;  %2606 = vst [vmem:[%s4915_s25 + $0x68] sm:$0xff] %v1452_v32  ;;  %p4215_p6 = scmp.lt.s32.totalorder %s5172_s12, %s4213_s19 }
 0x3a8   : > { %v4968_v5 = vpop.f32.mrf.mxu1 }
 0x3a9   : > { %3458 = vmatprep.mubr.bf16.mxu0 %v1469_v33  ;;  %v3256_v12 = vadd.f32 %v4968_v5, %v4965_v4 }
 0x3aa   : > { %3459 = vmatmul.mubr.bf16.gmra.mxu0 %v1470_v35  ;;  %v4970_v6 = vpop.f32.mrf.mxu1 }
 0x3ab   : > { %3478 = vmatprep.mubr.bf16.mxu0 %v1689_v34 }
 0x3ac   : > { %v4972_v7 = vpop.f32.mrf.mxu1 }
 0x3ad   : > { %v3259_v5 = vadd.f32 %v4972_v7, %v4970_v6 }
 0x3ae   : > { %v4974_v8 = vpop.f32.mrf.mxu1 }
 0x3b0   : > { %v4976_v9 = vpop.f32.mrf.mxu1 }
 0x3b2   : > { %3479 = vmatmul.mubr.bf16.vlgmr.msra.gmra.mxu0 %v1692_v39  ;;  %v4978_v10 = vpop.f32.mrf.mxu1 }
 0x3b3   : > { %3482 = vmatprep.mubr.bf16.mxu0 %v1695_v40  ;;  %3495 = vmatpush3.bf16.msra.mxu0 %v3818_v60 }
 0x3b4   : > { %3496 = vmatprep.subr.bf16.mxu0 %v3819_v61  ;;  %v4980_v14 = vpop.f32.mrf.mxu1 }
 0x3b6   : > { %v4982_v15 = vpop.f32.mrf.mxu1 }
 0x3b7   : > { %3497 = vmatpush3.bf16.msra.mxu0 %v3819_v61 }
 0x3b8   : > { %3498 = vmatprep.subr.bf16.mxu0 %v3820_v62  ;;  %v4984_v17 = vpop.f32.mrf.mxu1 }
 0x3ba   : > { %3483 = vmatmul.mubr.bf16.gmra.mxu0 %v1698_v48  ;;  %v4986_v19 = vpop.f32.mrf.mxu1 }
 0x3bb   : > { %3486 = vmatprep.mubr.bf16.mxu0 %v1701_v50  ;;  %3499 = vmatpush3.bf16.msra.mxu0 %v3820_v62 }
 0x3bc   : > { %3500 = vmatprep.subr.bf16.mxu0 %v3821_v63  ;;  %v4988_v20 = vpop.f32.mrf.mxu1 }
 0x3be   : > { %v4995_v23 = vpop.f32.mrf.mxu1 }
 0x3bf   : > { %3501 = vmatpush3.bf16.msra.mxu0 %v3821_v63 }
 0x3c0   : > { %3502 = vmatprep.subr.bf16.mxu0 %v3822_v0  ;;  %v5003_v28 = vpop.f32.mrf.mxu1 }
 0x3c2   : > { %3487 = vmatmul.mubr.bf16.gmra.mxu0 %v1704_v55  ;;  %v5009_v32 = vpop.f32.mrf.mxu1 }
 0x3c3   : > { %3490 = vmatprep.mubr.bf16.mxu0 %v1707_v56  ;;  %3503 = vmatpush3.bf16.msra.mxu0 %v3822_v0 }
 0x3c4   : > { %3504 = vmatprep.subr.bf16.mxu0 %v3823_v1  ;;  %v5012_v33 = vpop.f32.mrf.mxu1 }
 0x3c5   : > { %v3277_v6 = vadd.f32 %v5012_v33, %v5009_v32 }
 0x3c6   : > { %v5014_v35 = vpop.f32.mrf.mxu1 }
 0x3c7   : > { %3505 = vmatpush3.bf16.msra.mxu0 %v3823_v1 }
 0x3c8   : > { %3506 = vmatprep.subr.bf16.mxu0 %v3824_v2  ;;  %v5019_v39 = vpop.f32.mrf.mxu1 }
 0x3ca   : > { %3491 = vmatmul.mubr.bf16.gmra.mxu0 %v1710_v59  ;;  %v5025_v45 = vpop.f32.mrf.mxu1 }
 0x3cb   : > { %3507 = vmatpush3.bf16.msra.mxu0 %v3824_v2 }
 0x3cc   : > { %3508 = vmatprep.subr.bf16.mxu0 %v3825_v3  ;;  %v5028_v47 = vpop.f32.mrf.mxu1 }
 0x3ce   : > { %v5030_v50 = vpop.f32.mrf.mxu1 }
 0x3cf   : > { %3509 = vmatpush3.bf16.msra.mxu0 %v3825_v3 }
 0x3d0   : > { %3558 = vmatprep.subr.bf16.mxu0 %v4833_v41  ;;  %v3828_v41 = vld [vmem:[#allocation14 + $0x28] sm:$0xff]   ;;  %v5035_v55 = vpop.f32.mrf.mxu1 }
 0x3d1   : > { %3530 = vmatprep.subr.bf16.mxu1 %v3828_v41 }
 0x3d2   : > { %3531 = vmatpush3.bf16.msra.mxu1 %v3828_v41  ;;  %v3287_v59 = vpop.f32.mrf.mxu1 }
 0x3d3   : > { %3532 = vmatprep.subr.bf16.mxu1 %v3829_v16 }
 0x3d4   : > { %v3288_v60 = vpop.f32.mrf.mxu1 }
 0x3d6   : > { %3533 = vmatpush3.bf16.msra.mxu1 %v3829_v16  ;;  %v5042_v62 = vpop.f32.mrf.mxu1  ;;  %v5056_v16 = vld [vmem:[%s5365_s9] ss:$0 sm:$0xff] }
 0x3d7   : > { %3534 = vmatprep.subr.bf16.mxu1 %v3830_v18 }
 0x3d8   : > { %v5047_v3 = vpop.f32.mrf.mxu1 }
 0x3da   : > { %3535 = vmatpush3.bf16.msra.mxu1 %v3830_v18  ;;  %v3265_v18 = vadd.f32 %v4980_v14, %v4978_v10  ;;  %v5064_v4 = vpop.f32.mrf.mxu1 }
 0x43a   : > { %v3448_v22 = vpop.f32.mrf.mxu0 }
 0x43b   : > { %v1585_v24 = vadd.f32 %v3448_v22, %v4993_v21 }
 0x43c   : > { %v1576_v25 = vpop.f32.mrf.mxu0 }
 0x43d   : > { %2627 = vst [vmem:[%s4999_s14 + $0x10] sm:$0xff] %v1585_v24  ;;  %v1577_v26 = vadd.f32 %v4993_v21, %v1576_v25  ;;  %v3262_v24 = vadd.f32 %v4976_v9, %v4974_v8  ;;  %v3268_v8 = vadd.f32 %v4984_v17, %v4982_v15 }
 0x43e   : > { %v3449_v27 = vpop.f32.mrf.mxu0 }
 0x43f   : > { %2625 = vst [vmem:[%s4999_s14] sm:$0xff] %v1577_v26  ;;  %v1588_v29 = vadd.f32 %v3449_v27, %v4993_v21  ;;  %v1945_v26 = vadd.f32 %v3256_v12, %v5056_v16  ;;  %v1953_v10 = vadd.f32 %v3262_v24, %v5056_v16  ;;  %v1961_v15 = vadd.f32 %v3268_v8, %v5056_v16  ;;  %v5101_v8 = vld [vmem:[#allocation16 + $0x38] sm:$0xff]  }
 0x440   : > { %v1579_v30 = vpop.f32.mrf.mxu0 }
 0x441   : > { %2628 = vst [vmem:[%s4999_s14 + $0x18] sm:$0xff] %v1588_v29  ;;  %v1580_v31 = vadd.f32 %v4993_v21, %v1579_v30  ;;  %v1956_v30 = vadd.f32 %v3265_v18, %v5056_v16 }
 0x443   : > { %2626 = vst [vmem:[%s4999_s14 + $0x8] sm:$0xff] %v1580_v31  ;;  %v3294_v31 = vpop.f32.mrf.mxu1 }
 0x44a   : > { %v3452_v34 = vpop.f32.mrf.mxu0 }
 0x44b   : > { %v1601_v36 = vadd.f32 %v3452_v34, %v4993_v21  ;;  %v1948_v34 = vadd.f32 %v3259_v5, %v5056_v16 }
 0x44c   : > { %v1592_v37 = vpop.f32.mrf.mxu0 }
 0x44d   : > { %2631 = vst [vmem:[%s4999_s14 + $0x30] sm:$0xff] %v1601_v36  ;;  %v1593_v38 = vadd.f32 %v4993_v21, %v1592_v37 }
 0x44e   : > { %v3453_v11 = vpop.f32.mrf.mxu0 }
 0x44f   : > { %2629 = vst [vmem:[%s4999_s14 + $0x20] sm:$0xff] %v1593_v38  ;;  %v1604_v40 = vadd.f32 %v3453_v11, %v4993_v21  ;;  %v3274_v38 = vadd.f32 %v5003_v28, %v4995_v23  ;;  %v3280_v23 = vadd.f32 %v5019_v39, %v5014_v35 }
 0x450   : > { %v1595_v42 = vpop.f32.mrf.mxu0 }
 0x451   : > { %2632 = vst [vmem:[%s4999_s14 + $0x38] sm:$0xff] %v1604_v40  ;;  %v1596_v44 = vadd.f32 %v4993_v21, %v1595_v42  ;;  %v3296_v40 = vpop.f32.mrf.mxu1  ;;  %v3271_v42 = vadd.f32 %v4988_v20, %v4986_v19  ;;  %v1969_v32 = vadd.f32 %v3274_v38, %v5056_v16  ;;  %v3289_v20 = vadd.f32 %v3288_v60, %v3287_v59 }
 0x452   : > { %v1977_v35 = vadd.f32 %v3280_v23, %v5056_v16 }
 0x453   : > { %2630 = vst [vmem:[%s4999_s14 + $0x28] sm:$0xff] %v1596_v44 }
 0x45a   : > { %v3456_v48 = vpop.f32.mrf.mxu0 }
 0x45b   : > { %v1617_v51 = vadd.f32 %v3456_v48, %v4993_v21  ;;  %v1972_v48 = vadd.f32 %v3277_v6, %v5056_v16 }
 0x45c   : > { %v1608_v52 = vpop.f32.mrf.mxu0 }
 0x45d   : > { %2635 = vst [vmem:[%s4999_s14 + $0x50] sm:$0xff] %v1617_v51  ;;  %v1609_v53 = vadd.f32 %v4993_v21, %v1608_v52  ;;  %v3297_v51 = vpop.f32.mrf.mxu1  ;;  %v1964_v52 = vadd.f32 %v3271_v42, %v5056_v16 }
 0x45e   : > { %v3457_v54 = vpop.f32.mrf.mxu0 }
 0x45f   : > { %2633 = vst [vmem:[%s4999_s14 + $0x40] sm:$0xff] %v1609_v53  ;;  %v1620_v56 = vadd.f32 %v3457_v54, %v4993_v21 }
 0x460   : > { %v1611_v57 = vpop.f32.mrf.mxu0 }
 0x461   : > { %2636 = vst [vmem:[%s4999_s14 + $0x58] sm:$0xff] %v1620_v56  ;;  %v1612_v58 = vadd.f32 %v4993_v21, %v1611_v57  ;;  %v3286_v56 = vadd.f32 %v5035_v55, %v5030_v50  ;;  %v3292_v55 = vadd.f32 %v5047_v3, %v5042_v62 }
 0x463   : > { %2634 = vst [vmem:[%s4999_s14 + $0x48] sm:$0xff] %v1612_v58  ;;  %v3299_v58 = vpop.f32.mrf.mxu1  ;;  %v1985_v60 = vadd.f32 %v3286_v56, %v5056_v16  ;;  %v1993_v62 = vadd.f32 %v3292_v55, %v5056_v16 }
 0x46a   : > { %v3460_v61 = vpop.f32.mrf.mxu0 }
 0x46b   : > { %v1633_v63 = vadd.f32 %v3460_v61, %v4993_v21  ;;  %v3283_v61 = vadd.f32 %v5028_v47, %v5025_v45 }
 0x46c   : > { %v1624_v0 = vpop.f32.mrf.mxu0 }
 0x46d   : > { %2639 = vst [vmem:[%s4999_s14 + $0x70] sm:$0xff] %v1633_v63  ;;  %v1625_v1 = vadd.f32 %v4993_v21, %v1624_v0  ;;  %v1988_v0 = vadd.f32 %v3289_v20, %v5056_v16  ;;  %v1980_v45 = vadd.f32 %v3283_v61, %v5056_v16  ;;  %v3833_v61 = vld [vmem:[#allocation14] sm:$0xff]  }
 0x46e   : > { %v3461_v2 = vpop.f32.mrf.mxu0 }
 0x46f   : > { %2637 = vst [vmem:[%s4999_s14 + $0x60] sm:$0xff] %v1625_v1  ;;  %v1636_v13 = vadd.f32 %v3461_v2, %v4993_v21  ;;  %v3300_v2 = vpop.f32.mrf.mxu1 }
 0x470   : > { %v1627_v41 = vpop.f32.mrf.mxu0  ;;  %v3301_v24 = vadd.f32 %v3300_v2, %v3299_v58  ;;  %v3832_v58 = vld [vmem:[#allocation14 + $0x8] sm:$0xff]  }
 0x471   : > { %2640 = vst [vmem:[%s4999_s14 + $0x78] sm:$0xff] %v1636_v13  ;;  %v1628_v22 = vadd.f32 %v4993_v21, %v1627_v41  ;;  %v3298_v41 = vadd.f32 %v3297_v51, %v3296_v40 }
 0x472   : > { %v3480_v25 = vpop.f32.mrf.mxu0 }
 0x473   : > { %2638 = vst [vmem:[%s4999_s14 + $0x68] sm:$0xff] %v1628_v22  ;;  %v2050_v36 = vadd.f32 %v3480_v25, %v1953_v10  ;;  %v2001_v3 = vadd.f32 %v3298_v41, %v5056_v16 }
 0x474   : > { %v2041_v27 = vpop.f32.mrf.mxu0 }
 0x475   : > { %v2042_v29 = vadd.f32 %v2041_v27, %v1945_v26 }
 0x476   : > { %v3481_v14 = vpop.f32.mrf.mxu0 }
 0x477   : > { %v2053_v9 = vadd.f32 %v3481_v14, %v1956_v30  ;;  %3898 = vtanh.f32 %v2042_v29  ;;  %v3295_v29 = vadd.f32 %v3294_v31, %v5064_v4  ;;  %v2004_v14 = vadd.f32 %v3301_v24, %v5056_v16 }
 0x478   : > { %v2044_v37 = vpop.f32.mrf.mxu0 }
 0x479   : > { %v2045_v7 = vadd.f32 %v2044_v37, %v1948_v34  ;;  %3900 = vtanh.f32 %v2053_v9  ;;  %v1996_v37 = vadd.f32 %v3295_v29, %v5056_v16 }
 0x47a   : > { %v3484_v11 = vpop.f32.mrf.mxu0 }
 0x47b   : > { %3902 = vtanh.f32 %v2045_v7  ;;  %v2066_v53 = vadd.f32 %v3484_v11, %v1969_v32 }
 0x47c   : > { %3904 = vtanh.f32 %v2050_v36  ;;  %v2057_v17 = vpop.f32.mrf.mxu0  ;;  %v5104_v36 = vld [vmem:[#allocation16 + $0x30] sm:$0xff]  }
 0x47d   : > { %v2058_v44 = vadd.f32 %v2057_v17, %v1961_v15  ;;  %v5109_v17 = vld [vmem:[#allocation16 + $0x28] sm:$0xff]  }
 0x47e   : > { %v3485_v33 = vpop.f32.mrf.mxu0 }
 0x47f   : > { %v2069_v28 = vadd.f32 %v3485_v33, %v1972_v48  ;;  %3906 = vtanh.f32 %v2058_v44  ;;  %v5113_v44 = vld [vmem:[#allocation16 + $0x20] sm:$0xff]  }
 0x480   : > { %v2060_v19 = vpop.f32.mrf.mxu0 }
 0x481   : > { %v2061_v54 = vadd.f32 %v2060_v19, %v1964_v52  ;;  %3908 = vtanh.f32 %v2069_v28  ;;  %v5117_v28 = vld [vmem:[#allocation16 + $0x18] sm:$0xff]  }
 0x482   : > { %v3488_v57 = vpop.f32.mrf.mxu0 }
 0x483   : > { %3910 = vtanh.f32 %v2061_v54  ;;  %v2082_v13 = vadd.f32 %v3488_v57, %v1985_v60  ;;  %v3831_v57 = vld [vmem:[#allocation14 + $0x10] sm:$0xff]  }
 0x484   : > { %3912 = vtanh.f32 %v2066_v53  ;;  %v2073_v39 = vpop.f32.mrf.mxu0  ;;  %v3899_v59 = vpop.eup %3898  ;;  %3536 = vmatprep.subr.bf16.mxu1 %v3831_v57 }
 0x485   : > { %v2074_v63 = vadd.f32 %v2073_v39, %v1977_v35  ;;  %3537 = vmatpush3.bf16.msra.mxu1 %v3831_v57  ;;  %v3968_v57 = vld [vmem:[#allocation16 + $0x8] sm:$0xff]  }
 0x486   : > { %v3489_v1 = vpop.f32.mrf.mxu0  ;;  %v3901_v50 = vpop.eup %3900  ;;  %3538 = vmatprep.subr.bf16.mxu1 %v3832_v58 }
 0x487   : > { %v2085_v12 = vadd.f32 %v3489_v1, %v1988_v0  ;;  %3914 = vtanh.f32 %v2074_v63 }
 0x488   : > { %v3903_v47 = vpop.eup %3902  ;;  %v2076_v18 = vpop.f32.mrf.mxu0 }
 0x489   : > { %v3905_v22 = vpop.eup %3904  ;;  %v2077_v25 = vadd.f32 %v2076_v18, %v1980_v45  ;;  %v2120_v5 = vpack.c.bf16 %v3903_v47, %v3899_v59  ;;  %3916 = vtanh.f32 %v2085_v12  ;;  %3539 = vmatpush3.bf16.msra.mxu1 %v3832_v58 }
 0x48a   : > { %v3492_v26 = vpop.f32.mrf.mxu0  ;;  %v2121_v27 = vpack.c.bf16 %v3901_v50, %v3905_v22  ;;  %3540 = vmatprep.subr.bf16.mxu1 %v3833_v61 }
 0x48b   : > { %3918 = vtanh.f32 %v2077_v25  ;;  %3510 = vmatprep.mubr.bf16.mxu0 %v2120_v5  ;;  %v2098_v7 = vadd.f32 %v3492_v26, %v2001_v3 }
 0x48c   : > { %3920 = vtanh.f32 %v2082_v13  ;;  %v2089_v30 = vpop.f32.mrf.mxu0  ;;  %3511 = vmatmul.mubr.bf16.vlgmr.msra.gmra.mxu0 %v2121_v27  ;;  %v3907_v9 = vpop.eup %3906 }
 0x48d   : > { %v2090_v10 = vadd.f32 %v2089_v30, %v1993_v62  ;;  %3559 = vmatpush3.bf16.msra.mxu0 %v5101_v8  ;;  %3541 = vmatpush3.bf16.msra.mxu1 %v3833_v61 }
 0x48e   : > { %v3493_v34 = vpop.f32.mrf.mxu0  ;;  %3560 = vmatprep.subr.bf16.mxu0 %v5104_v36  ;;  %v3909_v4 = vpop.eup %3908  ;;  %3590 = vmatprep.subr.bf16.mxu1 %v5101_v8 }
 0x48f   : > { %v2101_v31 = vadd.f32 %v3493_v34, %v2004_v14  ;;  %3922 = vtanh.f32 %v2090_v10 }
 0x490   : > { %v3911_v6 = vpop.eup %3910  ;;  %v2092_v38 = vpop.f32.mrf.mxu0 }
 0x491   : > { %v3913_v11 = vpop.eup %3912  ;;  %v2093_v40 = vadd.f32 %v2092_v38, %v1996_v37  ;;  %v2122_v42 = vpack.c.bf16 %v3911_v6, %v3907_v9  ;;  %3561 = vmatpush3.bf16.msra.mxu0 %v5104_v36  ;;  %3924 = vtanh.f32 %v2101_v31 }
 0x492   : > { %v2123_v15 = vpack.c.bf16 %v3909_v4, %v3913_v11  ;;  %3562 = vmatprep.subr.bf16.mxu0 %v5109_v17 }
 0x493   : > { %3926 = vtanh.f32 %v2093_v40  ;;  %3514 = vmatprep.mubr.bf16.mxu0 %v2122_v42 }
 0x494   : > { %3928 = vtanh.f32 %v2098_v7  ;;  %3515 = vmatmul.mubr.bf16.gmra.mxu0 %v2123_v15  ;;  %v3915_v16 = vpop.eup %3914 }
 0x495   : > { %3563 = vmatpush3.bf16.msra.mxu0 %v5109_v17 }
 0x496   : > { %3564 = vmatprep.subr.bf16.mxu0 %v5113_v44  ;;  %v3917_v48 = vpop.eup %3916 }
 0x498   : > { %v3919_v32 = vpop.eup %3918 }
 0x499   : > { %v3921_v33 = vpop.eup %3920  ;;  %v2124_v51 = vpack.c.bf16 %v3919_v32, %v3915_v16  ;;  %3565 = vmatpush3.bf16.msra.mxu0 %v5113_v44 }
 0x49a   : > { %v2125_v23 = vpack.c.bf16 %v3917_v48, %v3921_v33  ;;  %3566 = vmatprep.subr.bf16.mxu0 %v5117_v28 }
 0x49b   : > { %3518 = vmatprep.mubr.bf16.mxu0 %v2124_v51 }
 0x49c   : > { %3519 = vmatmul.mubr.bf16.gmra.mxu0 %v2125_v23  ;;  %v3923_v52 = vpop.eup %3922 }
 0x49d   : > { %3567 = vmatpush3.bf16.msra.mxu0 %v5117_v28 }
 0x49e   : > { %3568 = vmatprep.subr.bf16.mxu0 %v4858_v43  ;;  %v3925_v53 = vpop.eup %3924 }
 0x4a0   : > { %v3927_v19 = vpop.eup %3926 }
 0x4a1   : > { %v3929_v20 = vpop.eup %3928  ;;  %v2126_v54 = vpack.c.bf16 %v3927_v19, %v3923_v52  ;;  %3569 = vmatpush3.bf16.msra.mxu0 %v4858_v43 }
 0x4a2   : > { %v2127_v56 = vpack.c.bf16 %v3925_v53, %v3929_v20  ;;  %3570 = vmatprep.subr.bf16.mxu0 %v4862_v46  ;;  %v3967_v53 = vld [vmem:[#allocation16 + $0x10] sm:$0xff]  }
 0x4a3   : > { %3522 = vmatprep.mubr.bf16.mxu0 %v2126_v54 }
 0x4a4   : > { %3523 = vmatmul.mubr.bf16.gmra.mxu0 %v2127_v56 }
 0x4a5   : > { %3571 = vmatpush3.bf16.msra.mxu0 %v4862_v46  ;;  %v3088_v46 = vld [vmem:[%s5367_s11] ss:$0 sm:$0xff] }
 0x4a6   : > { %3572 = vmatprep.subr.bf16.mxu0 %v4866_v49 }
 0x4a9   : > { %3573 = vmatpush3.bf16.msra.mxu0 %v4866_v49 }
 0x54c   : > { %v3512_v43 = vpop.f32.mrf.mxu0 }
 0x54d   : > { %v2242_v0 = vadd.f32 %v3512_v43, %v3088_v46 }
 0x54e   : > { %v2233_v35 = vpop.f32.mrf.mxu0 }
 0x54f   : > { %v2234_v39 = vadd.f32 %v3088_v46, %v2233_v35 }
 0x550   : > { %v3513_v63 = vpop.f32.mrf.mxu0 }
 0x551   : > { %v2245_v49 = vadd.f32 %v3513_v63, %v3088_v46  ;;  %3930 = vtanh.f32 %v2234_v39 }
 0x552   : > { %v2236_v59 = vpop.f32.mrf.mxu0 }
 0x553   : > { %v2237_v60 = vadd.f32 %v3088_v46, %v2236_v59  ;;  %3932 = vtanh.f32 %v2245_v49 }
 0x554   : > { %v3516_v1 = vpop.f32.mrf.mxu0 }
 0x555   : > { %3934 = vtanh.f32 %v2237_v60  ;;  %v2258_v45 = vadd.f32 %v3516_v1, %v3088_v46 }
 0x556   : > { %3936 = vtanh.f32 %v2242_v0  ;;  %v2249_v2 = vpop.f32.mrf.mxu0 }
 0x557   : > { %v2250_v50 = vadd.f32 %v3088_v46, %v2249_v2 }
 0x558   : > { %v3517_v55 = vpop.f32.mrf.mxu0 }
 0x559   : > { %v2261_v12 = vadd.f32 %v3517_v55, %v3088_v46  ;;  %3938 = vtanh.f32 %v2250_v50 }
 0x55a   : > { %v2252_v47 = vpop.f32.mrf.mxu0 }
 0x55b   : > { %v2253_v13 = vadd.f32 %v3088_v46, %v2252_v47  ;;  %3940 = vtanh.f32 %v2261_v12 }
 0x55c   : > { %v3520_v41 = vpop.f32.mrf.mxu0 }
 0x55d   : > { %3942 = vtanh.f32 %v2253_v13  ;;  %v2274_v29 = vadd.f32 %v3520_v41, %v3088_v46 }
 0x55e   : > { %3944 = vtanh.f32 %v2258_v45  ;;  %v2265_v18 = vpop.f32.mrf.mxu0  ;;  %v3931_v24 = vpop.eup %3930 }
 0x55f   : > { %v2266_v22 = vadd.f32 %v3088_v46, %v2265_v18 }
 0x560   : > { %v3521_v25 = vpop.f32.mrf.mxu0  ;;  %v3933_v5 = vpop.eup %3932 }
 0x561   : > { %v2277_v26 = vadd.f32 %v3521_v25, %v3088_v46  ;;  %3946 = vtanh.f32 %v2266_v22 }
 0x562   : > { %v3935_v27 = vpop.eup %3934  ;;  %v2268_v62 = vpop.f32.mrf.mxu0 }
 0x563   : > { %v3937_v3 = vpop.eup %3936  ;;  %v2269_v30 = vadd.f32 %v3088_v46, %v2268_v62  ;;  %v2312_v10 = vpack.c.bf16 %v3935_v27, %v3931_v24  ;;  %3948 = vtanh.f32 %v2277_v26 }
 0x564   : > { %v3524_v14 = vpop.f32.mrf.mxu0  ;;  %v2313_v9 = vpack.c.bf16 %v3933_v5, %v3937_v3 }
 0x565   : > { %3950 = vtanh.f32 %v2269_v30  ;;  %3542 = vmatprep.mubr.bf16.mxu1 %v2312_v10  ;;  %v2290_v11 = vadd.f32 %v3524_v14, %v3088_v46 }
 0x566   : > { %3952 = vtanh.f32 %v2274_v29  ;;  %v2281_v34 = vpop.f32.mrf.mxu0  ;;  %3543 = vmatmul.mubr.bf16.vlgmr.msra.gmra.mxu1 %v2313_v9  ;;  %v3939_v31 = vpop.eup %3938 }
 0x567   : > { %v2282_v4 = vadd.f32 %v3088_v46, %v2281_v34  ;;  %3598 = vmatpush3.bf16.msra.mxu1 %v5101_v8 }
 0x568   : > { %v3525_v37 = vpop.f32.mrf.mxu0  ;;  %3591 = vmatprep.subr.bf16.mxu1 %v5104_v36  ;;  %v3941_v6 = vpop.eup %3940 }
 0x569   : > { %v2293_v7 = vadd.f32 %v3525_v37, %v3088_v46  ;;  %3954 = vtanh.f32 %v2282_v4 }
 0x56a   : > { %v3943_v38 = vpop.eup %3942  ;;  %v2284_v40 = vpop.f32.mrf.mxu0 }
 0x56b   : > { %v3945_v42 = vpop.eup %3944  ;;  %v2285_v15 = vadd.f32 %v3088_v46, %v2284_v40  ;;  %v2314_v16 = vpack.c.bf16 %v3943_v38, %v3939_v31  ;;  %3599 = vmatpush3.bf16.msra.mxu1 %v5104_v36  ;;  %3956 = vtanh.f32 %v2293_v7 }
 0x56c   : > { %v2315_v48 = vpack.c.bf16 %v3941_v6, %v3945_v42  ;;  %3592 = vmatprep.subr.bf16.mxu1 %v5109_v17 }
 0x56d   : > { %3958 = vtanh.f32 %v2285_v15  ;;  %3546 = vmatprep.mubr.bf16.mxu1 %v2314_v16 }
 0x56e   : > { %3960 = vtanh.f32 %v2290_v11  ;;  %3547 = vmatmul.mubr.bf16.gmra.mxu1 %v2315_v48  ;;  %v3947_v8 = vpop.eup %3946 }
 0x56f   : > { %3600 = vmatpush3.bf16.msra.mxu1 %v5109_v17 }
 0x570   : > { %3593 = vmatprep.subr.bf16.mxu1 %v5113_v44  ;;  %v3949_v32 = vpop.eup %3948 }
 0x572   : > { %v3951_v33 = vpop.eup %3950 }
 0x573   : > { %v3953_v51 = vpop.eup %3952  ;;  %v2316_v23 = vpack.c.bf16 %v3951_v33, %v3947_v8  ;;  %3601 = vmatpush3.bf16.msra.mxu1 %v5113_v44  ;;  %v3969_v44 = vld [vmem:[#allocation16] sm:$0xff]  }
 0x574   : > { %v2317_v36 = vpack.c.bf16 %v3949_v32, %v3953_v51  ;;  %3594 = vmatprep.subr.bf16.mxu1 %v5117_v28 }
 0x575   : > { %3550 = vmatprep.mubr.bf16.mxu1 %v2316_v23 }
 0x576   : > { %3551 = vmatmul.mubr.bf16.gmra.mxu1 %v2317_v36  ;;  %v3955_v52 = vpop.eup %3954 }
 0x577   : > { %3602 = vmatpush3.bf16.msra.mxu1 %v5117_v28  ;;  %v3097_v28 = vld [vmem:[%s5369_s13] ss:$0 sm:$0xff] }
 0x578   : > { %3595 = vmatprep.subr.bf16.mxu1 %v3967_v53  ;;  %v3957_v17 = vpop.eup %3956 }
 0x57a   : > { %v3959_v19 = vpop.eup %3958 }
 0x57b   : > { %v3961_v20 = vpop.eup %3960  ;;  %v2318_v54 = vpack.c.bf16 %v3959_v19, %v3955_v52  ;;  %3603 = vmatpush3.bf16.msra.mxu1 %v3967_v53 }
 0x57c   : > { %v2319_v56 = vpack.c.bf16 %v3957_v17, %v3961_v20  ;;  %3596 = vmatprep.subr.bf16.mxu1 %v3968_v57 }
 0x57d   : > { %3554 = vmatprep.mubr.bf16.mxu1 %v2318_v54 }
 0x57e   : > { %3555 = vmatmul.mubr.bf16.gmra.mxu1 %v2319_v56 }
 0x57f   : > { %3604 = vmatpush3.bf16.msra.mxu1 %v3968_v57 }
 0x580   : > { %3597 = vmatprep.subr.bf16.mxu1 %v3969_v44 }
 0x583   : > { %3605 = vmatpush3.bf16.msra.mxu1 %v3969_v44 }
 0x626   : > { %v3544_v58 = vpop.f32.mrf.mxu1 }
 0x627   : > { %v2434_v61 = vadd.f32 %v3544_v58, %v3097_v28 }
 0x628   : > { %v2425_v43 = vpop.f32.mrf.mxu1 }
 0x629   : > { %2611 = vst [vmem:[%s5144_s18 + $0x10] sm:$0xff] %v2434_v61  ;;  %v2426_v46 = vadd.f32 %v3097_v28, %v2425_v43 }
 0x62a   : > { %v3545_v35 = vpop.f32.mrf.mxu1 }
 0x62b   : > { %2609 = vst [vmem:[%s5144_s18] sm:$0xff] %v2426_v46  ;;  %v2437_v39 = vadd.f32 %v3545_v35, %v3097_v28 }
 0x62c   : > { %v2428_v63 = vpop.f32.mrf.mxu1 }
 0x62d   : > { %2612 = vst [vmem:[%s5144_s18 + $0x18] sm:$0xff] %v2437_v39  ;;  %v2429_v49 = vadd.f32 %v3097_v28, %v2428_v63  ;;  %v2489_v1 = vpack.c.bf16 %v2437_v39, %v2434_v61 }
 0x62e   : > { %v3548_v0 = vpop.f32.mrf.mxu1 }
 0x62f   : > { %v2488_v59 = vpack.c.bf16 %v2429_v49, %v2426_v46  ;;  %2610 = vst [vmem:[%s5144_s18 + $0x8] sm:$0xff] %v2429_v49  ;;  %v2450_v60 = vadd.f32 %v3548_v0, %v3097_v28 }
 0x630   : > { %v2441_v2 = vpop.f32.mrf.mxu1 }
 0x631   : > { %2615 = vst [vmem:[%s5144_s18 + $0x30] sm:$0xff] %v2450_v60  ;;  %v2442_v50 = vadd.f32 %v3097_v28, %v2441_v2  ;;  %3574 = vmatprep.mubr.bf16.mxu0 %v2488_v59 }
 0x632   : > { %v3549_v55 = vpop.f32.mrf.mxu1  ;;  %3575 = vmatmul.mubr.bf16.vlgmr.msra.gmra.mxu0 %v2489_v1 }
 0x633   : > { %2613 = vst [vmem:[%s5144_s18 + $0x20] sm:$0xff] %v2442_v50  ;;  %v2453_v12 = vadd.f32 %v3549_v55, %v3097_v28 }
 0x634   : > { %v2444_v45 = vpop.f32.mrf.mxu1 }
 0x635   : > { %2616 = vst [vmem:[%s5144_s18 + $0x38] sm:$0xff] %v2453_v12  ;;  %v2445_v47 = vadd.f32 %v3097_v28, %v2444_v45  ;;  %v2491_v22 = vpack.c.bf16 %v2453_v12, %v2450_v60 }
 0x636   : > { %v3552_v13 = vpop.f32.mrf.mxu1 }
 0x637   : > { %v2490_v41 = vpack.c.bf16 %v2445_v47, %v2442_v50  ;;  %2614 = vst [vmem:[%s5144_s18 + $0x28] sm:$0xff] %v2445_v47  ;;  %v2466_v18 = vadd.f32 %v3552_v13, %v3097_v28 }
 0x638   : > { %v2457_v24 = vpop.f32.mrf.mxu1 }
 0x639   : > { %2619 = vst [vmem:[%s5144_s18 + $0x50] sm:$0xff] %v2466_v18  ;;  %v2458_v25 = vadd.f32 %v3097_v28, %v2457_v24  ;;  %3578 = vmatprep.mubr.bf16.mxu0 %v2490_v41 }
 0x63a   : > { %v3553_v5 = vpop.f32.mrf.mxu1  ;;  %3579 = vmatmul.mubr.bf16.gmra.mxu0 %v2491_v22 }
 0x63b   : > { %2617 = vst [vmem:[%s5144_s18 + $0x40] sm:$0xff] %v2458_v25  ;;  %v2469_v26 = vadd.f32 %v3553_v5, %v3097_v28 }
 0x63c   : > { %v2460_v27 = vpop.f32.mrf.mxu1 }
 0x63d   : > { %2620 = vst [vmem:[%s5144_s18 + $0x58] sm:$0xff] %v2469_v26  ;;  %v2461_v29 = vadd.f32 %v3097_v28, %v2460_v27  ;;  %v2493_v10 = vpack.c.bf16 %v2469_v26, %v2466_v18 }
 0x63e   : > { %v3556_v62 = vpop.f32.mrf.mxu1 }
 0x63f   : > { %v2492_v3 = vpack.c.bf16 %v2461_v29, %v2458_v25  ;;  %2618 = vst [vmem:[%s5144_s18 + $0x48] sm:$0xff] %v2461_v29  ;;  %v2482_v30 = vadd.f32 %v3556_v62, %v3097_v28 }
 0x640   : > { %v2473_v14 = vpop.f32.mrf.mxu1 }
 0x641   : > { %2623 = vst [vmem:[%s5144_s18 + $0x70] sm:$0xff] %v2482_v30  ;;  %v2474_v9 = vadd.f32 %v3097_v28, %v2473_v14  ;;  %3582 = vmatprep.mubr.bf16.mxu1 %v2492_v3 }
 0x642   : > { %v3557_v34 = vpop.f32.mrf.mxu1  ;;  %3583 = vmatmul.mubr.bf16.vlgmr.msra.gmra.mxu1 %v2493_v10 }
 0x643   : > { %2621 = vst [vmem:[%s5144_s18 + $0x60] sm:$0xff] %v2474_v9  ;;  %v2485_v4 = vadd.f32 %v3557_v34, %v3097_v28 }
 0x644   : > { %v2476_v31 = vpop.f32.mrf.mxu1 }
 0x645   : > { %2624 = vst [vmem:[%s5144_s18 + $0x78] sm:$0xff] %v2485_v4  ;;  %v2477_v37 = vadd.f32 %v3097_v28, %v2476_v31  ;;  %v2495_v7 = vpack.c.bf16 %v2485_v4, %v2482_v30 }
 0x647   : > { %v2494_v6 = vpack.c.bf16 %v2477_v37, %v2474_v9  ;;  %2622 = vst [vmem:[%s5144_s18 + $0x68] sm:$0xff] %v2477_v37  ;;  %s4214_s18 = scalar_lea.vmem %s4213_s19, 4096 }
 0x648   : > { %p4216_p0 = scmp.lt.s32.totalorder %s4214_s18, %s4208_s28 }
 0x649   : > { %3586 = vmatprep.mubr.bf16.mxu1 %v2494_v6 }
 0x64a   : > { %3587 = vmatmul.mubr.bf16.gmra.mxu1 %v2495_v7  ;;  %p4217_p3 = por %p4216_p0, %p4215_p6 }
 0x64c   : > { %p4218_p7 = pnand %p4217_p3, %p4211_p4 }
 0x64e   : > { %4221 = shalt.err (!%p4218_p7)
}
 0x64f   : > { %s4222_s2 = scalar_lea.hbm %s5170_s29, 2048  ;;  %s4226_s4 = scalar_lea.hbm %s5373_s17, 4096 }
 0x650   : > { %p4223_p8 = scmp.ne.s32.totalorder %s5170_s29, %s4222_s2  ;;  %p4227_p10 = scmp.lt.s32.totalorder %s5170_s29, %s5373_s17 }
 0x651   : > { %p4228_p9 = scmp.lt.s32.totalorder %s4226_s4, %s4222_s2 }
 0x652   : > { %p4224_p11 = pnand %p4223_p8, %p5441_p5 }
 0x653   : > { %p4229_p12 = por %p4228_p9, %p4227_p10 }
 0x654   : > { %p4225_p2 = pneg %p4224_p11 }
 0x656   : > { %p4230_p13 = pnand %p4229_p12, %p4225_p2 }
 0x658   : > { %4233 = shalt.err (!%p4230_p13)
}
 0x659   : > { %s5391_s28 = smov 128   ;;  %s5393_s27 = smov 8  }
 0x65a   : > { %3642 = dma.vmem_to_hbm [thread:$0]  (%p5441_p5), %s5172_s12, 2048, %s5170_s29, %s5182_s23, %s5391_s28, %s5391_s28, %s5393_s27  }
 0x65b   : > { %s5442_s2 = sld [smem:[#allocation47_spill]]  ;;  %s2686_s3 = sshll.u32 %s4915_s25, 4  ;;  %s5216_s3 = int_to_ptr.vmem [resolvable:$true] %s2686_s3 }
 0x65c   : > { %s2718_s4 = sshll.u32 %s4999_s14, 4  ;;  %s2658_s0 = scalar_lea.sflag [#allocation4], %s4744_s10  ;;  %s5218_s4 = int_to_ptr.vmem [resolvable:$true] %s2718_s4 }
 0x65d   : > { %s4234_s22 = scalar_lea.vmem %s5216_s3, 2048  ;;  %s4398_s12 = smov [#allocation17]  }
 0x65e   : > { %p4235_p1 = scmp.ne.s32.totalorder %s5216_s3, %s4234_s22  ;;  %s4238_s29 = sshll.u32 %s4398_s12, 4  ;;  %s4239_s29 = int_to_ptr.vmem [resolvable:$false] %s4238_s29 }
 0x65f   : > { %s4240_s19 = scalar_lea.vmem %s4239_s29, 4096  ;;  %p4241_p0 = scmp.lt.s32.totalorder %s5216_s3, %s4239_s29 }
 0x660   : > { %p4236_p4 = pnand %p4235_p1, %p5441_p5  ;;  %p4242_p3 = scmp.lt.s32.totalorder %s4240_s19, %s4234_s22 }
 0x661   : > { %s5212_s8 = scalar_lea.hbm %s5442_s2, %s5163_s16 }
 0x662   : > { %p4237_p6 = pneg %p4236_p4  ;;  %p4243_p7 = por %p4242_p3, %p4241_p0 }
 0x664   : > { %p4244_p8 = pnand %p4243_p7, %p4237_p6 }
 0x666   : > { %4247 = shalt.err (!%p4244_p8)
}
 0x667   : > { %s4248_s25 = scalar_lea.hbm %s5212_s8, 2048  ;;  %s4252_s12 = scalar_lea.hbm %s5442_s2, 4096 }
 0x668   : > { %p4249_p11 = scmp.ne.s32.totalorder %s5212_s8, %s4248_s25  ;;  %p4253_p9 = scmp.lt.s32.totalorder %s5212_s8, %s5442_s2 }
 0x669   : > { %p4254_p12 = scmp.lt.s32.totalorder %s4252_s12, %s4248_s25 }
 0x66a   : > { %p4250_p2 = pnand %p4249_p11, %p5441_p5 }
 0x66b   : > { %p4255_p13 = por %p4254_p12, %p4253_p9 }
 0x66c   : > { %p4251_p10 = pneg %p4250_p2 }
 0x66e   : > { %p4256_p1 = pnand %p4255_p13, %p4251_p10 }
 0x670   : > { %4259 = shalt.err (!%p4256_p1)
}
 0x671   : > { %s5443_s22 = smov 8   ;;  %s5444_s29 = smov 128  }
 0x672   : > { %3641 = dma.vmem_to_hbm [thread:$0]  (%p5441_p5), %s5216_s3, 2048, %s5212_s8, %s2658_s0, %s5444_s29, %s5444_s29, %s5443_s22  }
 0x673   : > { %s4260_s19 = scalar_lea.vmem %s5218_s4, 2048  ;;  %s4399_s28 = smov [#allocation20]  }
 0x674   : > { %p4261_p4 = scmp.ne.s32.totalorder %s5218_s4, %s4260_s19  ;;  %s4264_s27 = sshll.u32 %s4399_s28, 4  ;;  %s4265_s27 = int_to_ptr.vmem [resolvable:$false] %s4264_s27 }
 0x675   : > { %s4266_s25 = scalar_lea.vmem %s4265_s27, 4096  ;;  %p4267_p3 = scmp.lt.s32.totalorder %s5218_s4, %s4265_s27 }
 0x676   : > { %p4262_p6 = pnand %p4261_p4, %p5441_p5  ;;  %p4268_p7 = scmp.lt.s32.totalorder %s4266_s25, %s4260_s19 }
 0x678   : > { %p4263_p0 = pneg %p4262_p6  ;;  %p4269_p8 = por %p4268_p7, %p4267_p3 }
 0x67a   : > { %p4270_p11 = pnand %p4269_p8, %p4263_p0 }
 0x67c   : > { %4273 = shalt.err (!%p4270_p11)
}
 0x67d   : > { %s4274_s14 = scalar_lea.hbm %s5178_s24, 2048  ;;  %s4278_s0 = scalar_lea.hbm %s5440_s6, 4096 }
 0x67e   : > { %p4275_p2 = scmp.ne.s32.totalorder %s5178_s24, %s4274_s14  ;;  %p4279_p12 = scmp.lt.s32.totalorder %s5178_s24, %s5440_s6 }
 0x67f   : > { %p4280_p13 = scmp.lt.s32.totalorder %s4278_s0, %s4274_s14 }
 0x680   : > { %p4276_p10 = pnand %p4275_p2, %p5441_p5 }
 0x681   : > { %p4281_p1 = por %p4280_p13, %p4279_p12 }
 0x682   : > { %p4277_p9 = pneg %p4276_p10 }
 0x684   : > { %p4282_p4 = pnand %p4281_p1, %p4277_p9 }
 0x686   : > { %4285 = shalt.err (!%p4282_p4)
}
 0x687   : > { %3643 = dma.vmem_to_hbm [thread:$0]  (%p5441_p5), %s5218_s4, 2048, %s5178_s24, %s5182_s23, %s5444_s29, %s5444_s29, %s5443_s22  }
 0x688   : > { %s5270_s19 = scalar_lea.vmem [#allocation21], %s4906_s20  ;;  %s5445_s4 = sld [smem:[#allocation49_spill]] }
 0x689   : > { %s2734_s20 = sshll.u32 %s5270_s19, 4  ;;  %s2673_s27 = scalar_lea.sflag [#allocation22], %s4744_s10  ;;  %s5309_s20 = int_to_ptr.vmem [resolvable:$true] %s2734_s20 }
 0x68a   : > { %s4286_s25 = scalar_lea.vmem %s5309_s20, 2048  ;;  %s4400_s14 = smov [#allocation21]  }
 0x68b   : > { %p4287_p6 = scmp.ne.s32.totalorder %s5309_s20, %s4286_s25  ;;  %s4290_s8 = sshll.u32 %s4400_s14, 4  ;;  %s4291_s8 = int_to_ptr.vmem [resolvable:$false] %s4290_s8 }
 0x68c   : > { %s4292_s3 = scalar_lea.vmem %s4291_s8, 4096  ;;  %p4293_p7 = scmp.lt.s32.totalorder %s5309_s20, %s4291_s8 }
 0x68d   : > { %p4288_p0 = pnand %p4287_p6, %p5441_p5  ;;  %p4294_p8 = scmp.lt.s32.totalorder %s4292_s3, %s4286_s25 }
 0x68e   : > { %s5307_s28 = scalar_lea.hbm %s5445_s4, %s5163_s16 }
 0x68f   : > { %p4289_p3 = pneg %p4288_p0  ;;  %p4295_p11 = por %p4294_p8, %p4293_p7 }
 0x691   : > { %p4296_p2 = pnand %p4295_p11, %p4289_p3 }
 0x6f2   : > { %v3576_v38 = vpop.f32.mrf.mxu0 }
 0x6f3   : > { %v2539_v11 = vadd.f32 %v3576_v38, %v4993_v21 }
 0x6f4   : > { %v2530_v40 = vpop.f32.mrf.mxu0 }
 0x6f5   : > { %2643 = vst [vmem:[%s5270_s19 + $0x10] sm:$0xff] %v2539_v11  ;;  %v2531_v42 = vadd.f32 %v4993_v21, %v2530_v40 }
 0x6f6   : > { %v3577_v15 = vpop.f32.mrf.mxu0 }
 0x6f7   : > { %2641 = vst [vmem:[%s5270_s19] sm:$0xff] %v2531_v42  ;;  %v2542_v16 = vadd.f32 %v3577_v15, %v4993_v21 }
 0x6f8   : > { %v2533_v48 = vpop.f32.mrf.mxu0 }
 0x6f9   : > { %2644 = vst [vmem:[%s5270_s19 + $0x18] sm:$0xff] %v2542_v16  ;;  %v2534_v8 = vadd.f32 %v4993_v21, %v2533_v48 }
 0x6fa   : > { %v3580_v32 = vpop.f32.mrf.mxu0 }
 0x6fb   : > { %2642 = vst [vmem:[%s5270_s19 + $0x8] sm:$0xff] %v2534_v8  ;;  %v2555_v33 = vadd.f32 %v3580_v32, %v4993_v21 }
 0x6fc   : > { %v2546_v51 = vpop.f32.mrf.mxu0 }
 0x6fd   : > { %2647 = vst [vmem:[%s5270_s19 + $0x30] sm:$0xff] %v2555_v33  ;;  %v2547_v23 = vadd.f32 %v4993_v21, %v2546_v51 }
 0x6fe   : > { %v3581_v36 = vpop.f32.mrf.mxu0 }
 0x6ff   : > { %2645 = vst [vmem:[%s5270_s19 + $0x20] sm:$0xff] %v2547_v23  ;;  %v2558_v52 = vadd.f32 %v3581_v36, %v4993_v21 }
 0x700   : > { %v2549_v53 = vpop.f32.mrf.mxu0 }
 0x701   : > { %2648 = vst [vmem:[%s5270_s19 + $0x38] sm:$0xff] %v2558_v52  ;;  %v2550_v17 = vadd.f32 %v4993_v21, %v2549_v53 }
 0x702   : > { %v3584_v19 = vpop.f32.mrf.mxu1 }
 0x703   : > { %2646 = vst [vmem:[%s5270_s19 + $0x28] sm:$0xff] %v2550_v17  ;;  %v2571_v20 = vadd.f32 %v3584_v19, %v4993_v21 }
 0x704   : > { %v2562_v54 = vpop.f32.mrf.mxu1 }
 0x705   : > { %2651 = vst [vmem:[%s5270_s19 + $0x50] sm:$0xff] %v2571_v20  ;;  %v2563_v56 = vadd.f32 %v4993_v21, %v2562_v54 }
 0x706   : > { %v3585_v57 = vpop.f32.mrf.mxu1 }
 0x707   : > { %2649 = vst [vmem:[%s5270_s19 + $0x40] sm:$0xff] %v2563_v56  ;;  %v2574_v44 = vadd.f32 %v3585_v57, %v4993_v21 }
 0x708   : > { %v2565_v28 = vpop.f32.mrf.mxu1 }
 0x709   : > { %2652 = vst [vmem:[%s5270_s19 + $0x58] sm:$0xff] %v2574_v44  ;;  %v2566_v58 = vadd.f32 %v4993_v21, %v2565_v28 }
 0x70a   : > { %v3588_v61 = vpop.f32.mrf.mxu1 }
 0x70b   : > { %2650 = vst [vmem:[%s5270_s19 + $0x48] sm:$0xff] %v2566_v58  ;;  %v2587_v43 = vadd.f32 %v3588_v61, %v4993_v21 }
 0x70c   : > { %v2578_v46 = vpop.f32.mrf.mxu1 }
 0x70d   : > { %2655 = vst [vmem:[%s5270_s19 + $0x70] sm:$0xff] %v2587_v43  ;;  %v2579_v35 = vadd.f32 %v4993_v21, %v2578_v46 }
 0x70e   : > { %v3589_v39 = vpop.f32.mrf.mxu1 }
 0x70f   : > { %2653 = vst [vmem:[%s5270_s19 + $0x60] sm:$0xff] %v2579_v35  ;;  %v2590_v63 = vadd.f32 %v3589_v39, %v4993_v21 }
 0x710   : > { %v2581_v49 = vpop.f32.mrf.mxu1 }
 0x711   : > { %2656 = vst [vmem:[%s5270_s19 + $0x78] sm:$0xff] %v2590_v63  ;;  %v2582_v0 = vadd.f32 %v4993_v21, %v2581_v49 }
 0x713   : > { %2654 = vst [vmem:[%s5270_s19 + $0x68] sm:$0xff] %v2582_v0 }
 0x714   : > { %4299 = shalt.err (!%p4296_p2)
}
 0x715   : > { %s4300_s16 = scalar_lea.hbm %s5307_s28, 2048  ;;  %s4304_s18 = scalar_lea.hbm %s5445_s4, 4096 }
 0x716   : > { %p4301_p10 = scmp.ne.s32.totalorder %s5307_s28, %s4300_s16  ;;  %p4305_p13 = scmp.lt.s32.totalorder %s5307_s28, %s5445_s4 }
 0x717   : > { %p4306_p1 = scmp.lt.s32.totalorder %s4304_s18, %s4300_s16 }
 0x718   : > { %p4302_p9 = pnand %p4301_p10, %p5441_p5 }
 0x719   : > { %p4307_p4 = por %p4306_p1, %p4305_p13 }
 0x71a   : > { %p4303_p12 = pneg %p4302_p9 }
 0x71c   : > { %p4308_p6 = pnand %p4307_p4, %p4303_p12 }
 0x71e   : > { %4311 = shalt.err (!%p4308_p6)
}
 0x71f   : > { %3644 = dma.vmem_to_hbm [thread:$0]  (%p5441_p5), %s5309_s20, 2048, %s5307_s28, %s2673_s27, %s5444_s29, %s5444_s29, %s5443_s22  }
 0x720 PF: > { %s5446_s24 = sld [smem:[#allocation32_spill]]  ;;  %p5449_p3 = scmp.ge.s32.totalorder %s4378_s21, 2 }
 0x721   : > { %s5447_s23 = sld [smem:[#allocation36_spill]] }
 0x726   : > { %s2749_s25 = sand.u32 1, %s5446_s24  }
 0x727   : > { %p5448_p0 = scmp.ne.s32.totalorder %s5447_s23, 0  ;;  %s2750_s14 = scalar_lea.sflag [#allocation4], %s2749_s25 }
 0x729   : > { %p3679_p7 = pnand %p5449_p3, %p5448_p0 }
 0x72b   : > { %p3680_p8 = pneg %p3679_p7 }
 0x72d   : > { %4353 = dma.done.wait (%p3680_p8), %s2750_s14, 2048  }
 0x72e   : > { %4355 = vsyncadd (%p3680_p8), %s2750_s14, 4294965248  ;;  %s5450_s1 = sadd.s32 4294967294, %s4378_s21  }
 0x72f   : > { %s2758_s8 = sand.u32 1, %s5450_s1  }
 0x730   : > { %s2759_s3 = scalar_lea.sflag [#allocation19], %s2758_s8 }
 0x731   : > { %4357 = dma.done.wait (%p3680_p8), %s2759_s3, 4096  }
 0x732   : > { %4359 = vsyncadd (%p3680_p8), %s2759_s3, 4294963200  ;;  %s2777_s16 = scalar_lea.sflag [#allocation22], %s2749_s25 }
 0x733   : > { %4361 = dma.done.wait (%p3680_p8), %s2777_s16, 2048  }
 0x734   : > { %4363 = vsyncadd (%p3680_p8), %s2777_s16, 4294965248  ;;  %s5451_s21 = sld [smem:[#allocation34_spill]]  ;;  %s5454_s0 = smov %s4370_s30 }
 0x735   : > { %s5452_s22 = sld [smem:[#allocation33_spill]] }
 0x736   : > { %s5453_s20 = sld [smem:[#allocation35_spill]] }
 0x73a   : > { %p45_p5 = scmp.ge.s32.totalorder %s5451_s21, 4  }
 0x73b   : > { %s5455_s30 = smov %s5452_s22 }
 0x73c   :  { %47 = sbr.rel (!%p45_p5) target bundleno = 28 (0x1c), region = 219 }
 0x741   :  { %2782 = vsyncpa [#allocation3], 1 }
 0x742   :  { %2784 = vsyncpa [#allocation3 + $0x1], 1 }
 0x743   :  { %2785 = vsyncpa [#allocation6], 1 }
 0x744   :  { %2787 = vsyncpa [#allocation6 + $0x1], 1 }
 0x745   :  { %2788 = vsyncpa [#allocation9], 1 }
 0x746   :  { %2789 = vsyncpa [#allocation12], 1 }
 0x747   :  { %2790 = vsyncpa [#allocation15], 1 }
 0x748   :  { %2791 = vsyncpa [#allocation4], 1 }
 0x749   :  { %2793 = vsyncpa [#allocation4 + $0x1], 1 }
 0x74a   :  { %2794 = vsyncpa [#allocation19], 1 }
 0x74b   :  { %2796 = vsyncpa [#allocation19 + $0x1], 1 }
 0x74c   :  { %2797 = vsyncpa [#allocation22], 1 }
 0x74d   :  { %2799 = vsyncpa [#allocation22 + $0x1], 1 }

</bundles_post_ra>
